<compile_context>
chip_gen: v7x
topology: tpu7x:2x2x1
jax: 0.10.0
libtpu: 0.0.40
codegen_flags: <defaults>
</compile_context>

<pallas_src>
import functools

import jax
import jax.numpy as jnp
from jax.experimental import pallas as pl
from jax.experimental.pallas import tpu as pltpu

KS = 7
PAD = (KS - 1) // 2


def _spatial_gate_kernel(aff_ref, w_ref, mask_ref, x_ref, o_ref, pad_ref, s2_ref,
                         *, C, H, W):
    # aff_ref:  (2,)          fused conv-bias + BN affine [scale, shift] in SMEM (prefetch)
    # w_ref:    (2*KS, KS)    conv weights, row (c*KS + dh), col dw, in VMEM
    # mask_ref: (KS, H*W)     per-dw horizontal validity masks (0/1 f32) in VMEM
    # x_ref:    (1, C, H*W)   lane-dense input block
    # o_ref:    (1, C, H*W)   lane-dense output block
    # pad_ref:  (2, 1, Lp)    zero-padded flat pooled maps, Lp = H*W + 2*(PAD*W + PAD)
    # s2_ref:   (2, KS, ROWL) 7 row-shifted windows per channel, ROWL = H*W + KS - 1
    HW = H * W
    ROWL = HW + KS - 1
    OFF = PAD * W + PAD  # flat offset of the pooled map inside its padded row

    # --- ChannelPool: fused single pass over C (running max + running sum) ---
    r0 = x_ref[0, 0:1, :].astype(jnp.float32)           # (1, HW)
    cmax = r0
    csum = r0
    for c in range(1, C):
        rc = x_ref[0, c:c + 1, :].astype(jnp.float32)
        cmax = jnp.maximum(cmax, rc)
        csum = csum + rc
    cmean = csum * (1.0 / C)

    # --- zero-padded *flat* pooled maps (emulates Conv2d padding=3 vertically) ---
    # Zeroing is tiny (~3 KB) and redone every step so the kernel stays correct when
    # the parallel batch axis is sharded across TensorCores.
    pad_ref[...] = jnp.zeros_like(pad_ref)
    pad_ref[0, :, OFF:OFF + HW] = cmax
    pad_ref[1, :, OFF:OFF + HW] = cmean

    # --- 7x7 conv in the flat domain ---
    # out_flat[i] = sum_{c,dw} hmask[dw][i] * sum_dh K[c,dh,dw] * pad_c[i + dh*W + dw]
    # where hmask kills horizontally-out-of-range taps (and the corner cases where a
    # vertically-out-of-range tap would alias real data).
    accs = [jnp.zeros((1, HW), jnp.float32), jnp.zeros((1, HW), jnp.float32)]
    t = 0
    for c in range(2):
        # Stack the 7 dh-shifted row windows of this channel into sublanes (fully
        # overwritten each step, so no zero-init needed).
        for dh in range(KS):
            s2_ref[c, dh:dh + 1, :] = pad_ref[c, :, dh * W: dh * W + ROWL]
        for dw in range(KS):
            blk = s2_ref[c, :, dw:dw + HW]                    # (KS, HW): one lane-shifted load covers all 7 dh taps
            wcol = w_ref[c * KS:(c + 1) * KS, dw:dw + 1]      # (KS, 1)
            col = jnp.sum(blk * wcol, axis=0, keepdims=True)  # vertical taps via sublane reduce -> (1, HW)
            accs[t & 1] = accs[t & 1] + col * mask_ref[dw:dw + 1, :]
            t += 1
    conv = accs[0] + accs[1]                                  # (1, HW)

    # --- conv bias + BatchNorm2d(1) (inference) fused affine, then sigmoid gate ---
    scale = jax.nn.sigmoid(conv * aff_ref[0] + aff_ref[1])    # (1, HW) f32

    # --- broadcast multiply over all channels; single dense (C, HW) store ---
    o_ref[0] = (x_ref[0].astype(jnp.float32) * scale).astype(o_ref.dtype)


def spatial_gate(x, conv_w, conv_b, bn_gamma, bn_beta, bn_mean, bn_var, eps=1e-5):
    """x: (N, C, H, W). conv_w: (1, 2, 7, 7). conv_b / BN params: (1,)."""
    N, C, H, W = x.shape
    HW = H * W
    Lp = HW + 2 * (PAD * W + PAD)
    ROWL = HW + KS - 1

    # Fold conv bias + BN (inference) into: y = conv_raw * s + t
    s = bn_gamma / jnp.sqrt(bn_var + eps)                     # (1,)
    t = (conv_b - bn_mean) * s + bn_beta                      # (1,)
    aff = jnp.stack([s[0], t[0]]).astype(jnp.float32)         # (2,) -> SMEM scalars

    w2 = conv_w.reshape(2 * KS, KS).astype(jnp.float32)       # (14, 7) -> VMEM

    # Horizontal validity masks: mask[dw, i] = 1 iff 0 <= (i mod W) + dw - PAD < W.
    col = jnp.arange(HW, dtype=jnp.int32) % W
    mask = jnp.stack(
        [((col >= (PAD - dw)) & (col < (W + PAD - dw))).astype(jnp.float32)
         for dw in range(KS)], axis=0)                        # (KS, HW)

    x3 = x.reshape(N, C, HW)                                  # lane-dense layout (free reshape)

    # Explicit VMEM budget: in+out blocks (double-buffered) + scratch + params + slack.
    itemsize = jnp.dtype(x.dtype).itemsize
    block_bytes = C * HW * itemsize
    scratch_bytes = (2 * Lp + 2 * KS * ROWL) * 4 + (2 * KS * KS + KS * HW) * 4
    vmem_needed = 4 * block_bytes + scratch_bytes + (2 << 20)
    vmem_limit = int(min(max(2 * vmem_needed, 32 << 20), 64 << 20))

    kernel = functools.partial(_spatial_gate_kernel, C=C, H=H, W=W)
    out3 = pl.pallas_call(
        kernel,
        out_shape=jax.ShapeDtypeStruct((N, C, HW), x.dtype),
        grid_spec=pltpu.PrefetchScalarGridSpec(
            num_scalar_prefetch=1,                            # aff -> SMEM
            grid=(N,),
            in_specs=[
                pl.BlockSpec((2 * KS, KS), lambda n, sref: (0, 0)),
                pl.BlockSpec((KS, HW), lambda n, sref: (0, 0)),
                pl.BlockSpec((1, C, HW), lambda n, sref: (n, 0, 0)),
            ],
            out_specs=pl.BlockSpec((1, C, HW), lambda n, sref: (n, 0, 0)),
            scratch_shapes=[
                pltpu.VMEM((2, 1, Lp), jnp.float32),
                pltpu.VMEM((2, KS, ROWL), jnp.float32),
            ],
        ),
        compiler_params=pltpu.CompilerParams(
            dimension_semantics=("parallel",),
            vmem_limit_bytes=vmem_limit,
        ),
    )(aff, w2, mask, x3)
    return out3.reshape(N, C, H, W)


def spatial_gate_ref(x, conv_w, conv_b, bn_gamma, bn_beta, bn_mean, bn_var, eps=1e-5):
    cmax = jnp.max(x, axis=1, keepdims=True)
    cmean = jnp.mean(x, axis=1, keepdims=True)
    pooled = jnp.concatenate([cmax, cmean], axis=1)           # (N, 2, H, W)
    y = jax.lax.conv_general_dilated(
        pooled, conv_w, window_strides=(1, 1),
        padding=[(PAD, PAD), (PAD, PAD)],
        dimension_numbers=("NCHW", "OIHW", "NCHW"))
    y = y + conv_b[None, :, None, None]
    y = (y - bn_mean[None, :, None, None]) / jnp.sqrt(bn_var[None, :, None, None] + eps)
    y = y * bn_gamma[None, :, None, None] + bn_beta[None, :, None, None]
    return x * jax.nn.sigmoid(y)


if __name__ == "__main__":
    key = jax.random.PRNGKey(0)
    kx, kw, kb = jax.random.split(key, 3)

    N, C, H, W = 2, 4, 16, 16
    x = jax.random.normal(kx, (N, C, H, W), dtype=jnp.float32)

    # Deterministic parameter init matching the module's __init__ shapes.
    conv_w = 0.1 * jax.random.normal(kw, (1, 2, KS, KS), dtype=jnp.float32)
    conv_b = 0.1 * jax.random.normal(kb, (1,), dtype=jnp.float32)
    bn_gamma = jnp.ones((1,), jnp.float32)    # PyTorch BatchNorm2d default init
    bn_beta = jnp.zeros((1,), jnp.float32)
    bn_mean = jnp.zeros((1,), jnp.float32)
    bn_var = jnp.ones((1,), jnp.float32)

    out = spatial_gate(x, conv_w, conv_b, bn_gamma, bn_beta, bn_mean, bn_var)
    out = jax.block_until_ready(out)

    ref = spatial_gate_ref(x, conv_w, conv_b, bn_gamma, bn_beta, bn_mean, bn_var)
    assert out.shape == (N, C, H, W)
    assert jnp.allclose(out, ref, atol=1e-5, rtol=1e-5), float(jnp.max(jnp.abs(out - ref)))

    print("KERNEL_OK")
</pallas_src>

<mosaic_0001>
module attributes {stable_mosaic.version = 11 : i64} {
  func.func @_spatial_gate_kernel(%arg0: i32, %arg1: memref<2xf32, #tpu.memory_space<smem>>, %arg2: memref<14x7xf32, #tpu.memory_space<vmem>>, %arg3: memref<7x256xf32, #tpu.memory_space<vmem>>, %arg4: memref<1x4x256xf32, #tpu.memory_space<vmem>>, %arg5: memref<1x4x256xf32, #tpu.memory_space<vmem>>, %arg6: memref<2x1x358xf32, #tpu.memory_space<vmem>>, %arg7: memref<2x7x262xf32, #tpu.memory_space<vmem>>) attributes {dimension_semantics = [#tpu.dimension_semantics<parallel>], iteration_bounds = array<i64: 2>, scalar_prefetch = 1 : i64, scratch_operands = 2 : i64, tpu.core_type = #tpu.core_type<tc>, window_params = [{pipeline_mode = #tpu.pipeline_mode<synchronous>, transform_indices = @transform_0, window_bounds = array<i64: 14, 7>}, {pipeline_mode = #tpu.pipeline_mode<synchronous>, transform_indices = @transform_1, window_bounds = array<i64: 7, 256>}, {transform_indices = @transform_2, window_bounds = array<i64: 1, 4, 256>}, {transform_indices = @transform_3, window_bounds = array<i64: 1, 4, 256>}]} {
    %c0 = arith.constant 0 : index
    %c0_0 = arith.constant 0 : index
    %c0_1 = arith.constant 0 : index
    %0 = vector.load %arg4[%c0, %c0_0, %c0_1] : memref<1x4x256xf32, #tpu.memory_space<vmem>>, vector<1x1x256xf32>
    %1 = vector.shape_cast %0 : vector<1x1x256xf32> to vector<1x256xf32>
    %c0_2 = arith.constant 0 : index
    %c1 = arith.constant 1 : index
    %c0_3 = arith.constant 0 : index
    %2 = vector.load %arg4[%c0_2, %c1, %c0_3] : memref<1x4x256xf32, #tpu.memory_space<vmem>>, vector<1x1x256xf32>
    %3 = vector.shape_cast %2 : vector<1x1x256xf32> to vector<1x256xf32>
    %4 = arith.maximumf %1, %3 : vector<1x256xf32>
    %5 = arith.addf %1, %3 : vector<1x256xf32>
    %c0_4 = arith.constant 0 : index
    %c2 = arith.constant 2 : index
    %c0_5 = arith.constant 0 : index
    %6 = vector.load %arg4[%c0_4, %c2, %c0_5] : memref<1x4x256xf32, #tpu.memory_space<vmem>>, vector<1x1x256xf32>
    %7 = vector.shape_cast %6 : vector<1x1x256xf32> to vector<1x256xf32>
    %8 = arith.maximumf %4, %7 : vector<1x256xf32>
    %9 = arith.addf %5, %7 : vector<1x256xf32>
    %c0_6 = arith.constant 0 : index
    %c3 = arith.constant 3 : index
    %c0_7 = arith.constant 0 : index
    %10 = vector.load %arg4[%c0_6, %c3, %c0_7] : memref<1x4x256xf32, #tpu.memory_space<vmem>>, vector<1x1x256xf32>
    %11 = vector.shape_cast %10 : vector<1x1x256xf32> to vector<1x256xf32>
    %12 = arith.maximumf %8, %11 : vector<1x256xf32>
    %13 = arith.addf %9, %11 : vector<1x256xf32>
    %cst = arith.constant 2.500000e-01 : f32
    %14 = vector.broadcast %cst : f32 to vector<1x256xf32>
    %15 = arith.mulf %13, %14 : vector<1x256xf32>
    %cst_8 = arith.constant 0.000000e+00 : f32
    %16 = vector.broadcast %cst_8 : f32 to vector<2x1x358xf32>
    %c0_9 = arith.constant 0 : index
    %c0_10 = arith.constant 0 : index
    %c0_11 = arith.constant 0 : index
    %17 = vector.load %arg6[%c0_9, %c0_10, %c0_11] : memref<2x1x358xf32, #tpu.memory_space<vmem>>, vector<2x1x358xf32>
    tpu.vector_store %arg6[%c0_9, %c0_10, %c0_11], %16 {strides = array<i32>} : memref<2x1x358xf32, #tpu.memory_space<vmem>>, vector<2x1x358xf32>,
    %c0_12 = arith.constant 0 : index
    %c0_13 = arith.constant 0 : index
    %c51 = arith.constant 51 : index
    %18 = vector.load %arg6[%c0_12, %c0_13, %c51] : memref<2x1x358xf32, #tpu.memory_space<vmem>>, vector<1x1x256xf32>
    %19 = vector.shape_cast %18 : vector<1x1x256xf32> to vector<1x256xf32>
    %20 = vector.shape_cast %12 : vector<1x256xf32> to vector<1x1x256xf32>
    tpu.vector_store %arg6[%c0_12, %c0_13, %c51], %20 {strides = array<i32>} : memref<2x1x358xf32, #tpu.memory_space<vmem>>, vector<1x1x256xf32>,
    %c1_14 = arith.constant 1 : index
    %c0_15 = arith.constant 0 : index
    %c51_16 = arith.constant 51 : index
    %21 = vector.load %arg6[%c1_14, %c0_15, %c51_16] : memref<2x1x358xf32, #tpu.memory_space<vmem>>, vector<1x1x256xf32>
    %22 = vector.shape_cast %21 : vector<1x1x256xf32> to vector<1x256xf32>
    %23 = vector.shape_cast %15 : vector<1x256xf32> to vector<1x1x256xf32>
    tpu.vector_store %arg6[%c1_14, %c0_15, %c51_16], %23 {strides = array<i32>} : memref<2x1x358xf32, #tpu.memory_space<vmem>>, vector<1x1x256xf32>,
    %cst_17 = arith.constant 0.000000e+00 : f32
    %24 = vector.broadcast %cst_17 : f32 to vector<1x256xf32>
    %cst_18 = arith.constant 0.000000e+00 : f32
    %25 = vector.broadcast %cst_18 : f32 to vector<1x256xf32>
    %c0_19 = arith.constant 0 : index
    %c0_20 = arith.constant 0 : index
    %c0_21 = arith.constant 0 : index
    %26 = vector.load %arg6[%c0_19, %c0_20, %c0_21] : memref<2x1x358xf32, #tpu.memory_space<vmem>>, vector<1x1x262xf32>
    %27 = vector.shape_cast %26 : vector<1x1x262xf32> to vector<1x262xf32>
    %c0_22 = arith.constant 0 : index
    %c0_23 = arith.constant 0 : index
    %c0_24 = arith.constant 0 : index
    %28 = vector.load %arg7[%c0_22, %c0_23, %c0_24] : memref<2x7x262xf32, #tpu.memory_space<vmem>>, vector<1x1x262xf32>
    %29 = vector.shape_cast %28 : vector<1x1x262xf32> to vector<1x262xf32>
    %30 = vector.shape_cast %27 : vector<1x262xf32> to vector<1x1x262xf32>
    tpu.vector_store %arg7[%c0_22, %c0_23, %c0_24], %30 {strides = array<i32>} : memref<2x7x262xf32, #tpu.memory_space<vmem>>, vector<1x1x262xf32>,
    %c0_25 = arith.constant 0 : index
    %c0_26 = arith.constant 0 : index
    %c16 = arith.constant 16 : index
    %31 = vector.load %arg6[%c0_25, %c0_26, %c16] : memref<2x1x358xf32, #tpu.memory_space<vmem>>, vector<1x1x262xf32>
    %32 = vector.shape_cast %31 : vector<1x1x262xf32> to vector<1x262xf32>
    %c0_27 = arith.constant 0 : index
    %c1_28 = arith.constant 1 : index
    %c0_29 = arith.constant 0 : index
    %33 = vector.load %arg7[%c0_27, %c1_28, %c0_29] : memref<2x7x262xf32, #tpu.memory_space<vmem>>, vector<1x1x262xf32>
    %34 = vector.shape_cast %33 : vector<1x1x262xf32> to vector<1x262xf32>
    %35 = vector.shape_cast %32 : vector<1x262xf32> to vector<1x1x262xf32>
    tpu.vector_store %arg7[%c0_27, %c1_28, %c0_29], %35 {strides = array<i32>} : memref<2x7x262xf32, #tpu.memory_space<vmem>>, vector<1x1x262xf32>,
    %c0_30 = arith.constant 0 : index
    %c0_31 = arith.constant 0 : index
    %c32 = arith.constant 32 : index
    %36 = vector.load %arg6[%c0_30, %c0_31, %c32] : memref<2x1x358xf32, #tpu.memory_space<vmem>>, vector<1x1x262xf32>
    %37 = vector.shape_cast %36 : vector<1x1x262xf32> to vector<1x262xf32>
    %c0_32 = arith.constant 0 : index
    %c2_33 = arith.constant 2 : index
    %c0_34 = arith.constant 0 : index
    %38 = vector.load %arg7[%c0_32, %c2_33, %c0_34] : memref<2x7x262xf32, #tpu.memory_space<vmem>>, vector<1x1x262xf32>
    %39 = vector.shape_cast %38 : vector<1x1x262xf32> to vector<1x262xf32>
    %40 = vector.shape_cast %37 : vector<1x262xf32> to vector<1x1x262xf32>
    tpu.vector_store %arg7[%c0_32, %c2_33, %c0_34], %40 {strides = array<i32>} : memref<2x7x262xf32, #tpu.memory_space<vmem>>, vector<1x1x262xf32>,
    %c0_35 = arith.constant 0 : index
    %c0_36 = arith.constant 0 : index
    %c48 = arith.constant 48 : index
    %41 = vector.load %arg6[%c0_35, %c0_36, %c48] : memref<2x1x358xf32, #tpu.memory_space<vmem>>, vector<1x1x262xf32>
    %42 = vector.shape_cast %41 : vector<1x1x262xf32> to vector<1x262xf32>
    %c0_37 = arith.constant 0 : index
    %c3_38 = arith.constant 3 : index
    %c0_39 = arith.constant 0 : index
    %43 = vector.load %arg7[%c0_37, %c3_38, %c0_39] : memref<2x7x262xf32, #tpu.memory_space<vmem>>, vector<1x1x262xf32>
    %44 = vector.shape_cast %43 : vector<1x1x262xf32> to vector<1x262xf32>
    %45 = vector.shape_cast %42 : vector<1x262xf32> to vector<1x1x262xf32>
    tpu.vector_store %arg7[%c0_37, %c3_38, %c0_39], %45 {strides = array<i32>} : memref<2x7x262xf32, #tpu.memory_space<vmem>>, vector<1x1x262xf32>,
    %c0_40 = arith.constant 0 : index
    %c0_41 = arith.constant 0 : index
    %c64 = arith.constant 64 : index
    %46 = vector.load %arg6[%c0_40, %c0_41, %c64] : memref<2x1x358xf32, #tpu.memory_space<vmem>>, vector<1x1x262xf32>
    %47 = vector.shape_cast %46 : vector<1x1x262xf32> to vector<1x262xf32>
    %c0_42 = arith.constant 0 : index
    %c4 = arith.constant 4 : index
    %c0_43 = arith.constant 0 : index
    %48 = vector.load %arg7[%c0_42, %c4, %c0_43] : memref<2x7x262xf32, #tpu.memory_space<vmem>>, vector<1x1x262xf32>
    %49 = vector.shape_cast %48 : vector<1x1x262xf32> to vector<1x262xf32>
    %50 = vector.shape_cast %47 : vector<1x262xf32> to vector<1x1x262xf32>
    tpu.vector_store %arg7[%c0_42, %c4, %c0_43], %50 {strides = array<i32>} : memref<2x7x262xf32, #tpu.memory_space<vmem>>, vector<1x1x262xf32>,
    %c0_44 = arith.constant 0 : index
    %c0_45 = arith.constant 0 : index
    %c80 = arith.constant 80 : index
    %51 = vector.load %arg6[%c0_44, %c0_45, %c80] : memref<2x1x358xf32, #tpu.memory_space<vmem>>, vector<1x1x262xf32>
    %52 = vector.shape_cast %51 : vector<1x1x262xf32> to vector<1x262xf32>
    %c0_46 = arith.constant 0 : index
    %c5 = arith.constant 5 : index
    %c0_47 = arith.constant 0 : index
    %53 = vector.load %arg7[%c0_46, %c5, %c0_47] : memref<2x7x262xf32, #tpu.memory_space<vmem>>, vector<1x1x262xf32>
    %54 = vector.shape_cast %53 : vector<1x1x262xf32> to vector<1x262xf32>
    %55 = vector.shape_cast %52 : vector<1x262xf32> to vector<1x1x262xf32>
    tpu.vector_store %arg7[%c0_46, %c5, %c0_47], %55 {strides = array<i32>} : memref<2x7x262xf32, #tpu.memory_space<vmem>>, vector<1x1x262xf32>,
    %c0_48 = arith.constant 0 : index
    %c0_49 = arith.constant 0 : index
    %c96 = arith.constant 96 : index
    %56 = vector.load %arg6[%c0_48, %c0_49, %c96] : memref<2x1x358xf32, #tpu.memory_space<vmem>>, vector<1x1x262xf32>
    %57 = vector.shape_cast %56 : vector<1x1x262xf32> to vector<1x262xf32>
    %c0_50 = arith.constant 0 : index
    %c6 = arith.constant 6 : index
    %c0_51 = arith.constant 0 : index
    %58 = vector.load %arg7[%c0_50, %c6, %c0_51] : memref<2x7x262xf32, #tpu.memory_space<vmem>>, vector<1x1x262xf32>
    %59 = vector.shape_cast %58 : vector<1x1x262xf32> to vector<1x262xf32>
    %60 = vector.shape_cast %57 : vector<1x262xf32> to vector<1x1x262xf32>
    tpu.vector_store %arg7[%c0_50, %c6, %c0_51], %60 {strides = array<i32>} : memref<2x7x262xf32, #tpu.memory_space<vmem>>, vector<1x1x262xf32>,
    %c0_52 = arith.constant 0 : index
    %c0_53 = arith.constant 0 : index
    %c0_54 = arith.constant 0 : index
    %61 = vector.load %arg7[%c0_52, %c0_53, %c0_54] : memref<2x7x262xf32, #tpu.memory_space<vmem>>, vector<1x7x256xf32>
    %62 = vector.shape_cast %61 : vector<1x7x256xf32> to vector<7x256xf32>
    %c0_55 = arith.constant 0 : index
    %c0_56 = arith.constant 0 : index
    %63 = vector.load %arg2[%c0_55, %c0_56] : memref<14x7xf32, #tpu.memory_space<vmem>>, vector<7x1xf32>
    %64 = vector.broadcast %63 : vector<7x1xf32> to vector<7x256xf32>
    %65 = arith.mulf %62, %64 : vector<7x256xf32>
    %cst_57 = arith.constant dense<0.000000e+00> : vector<256xf32>
    %66 = vector.multi_reduction <add>, %65, %cst_57 [0] : vector<7x256xf32> to vector<256xf32>
    %67 = vector.shape_cast %66 : vector<256xf32> to vector<1x256xf32>
    %c0_58 = arith.constant 0 : index
    %c0_59 = arith.constant 0 : index
    %68 = vector.load %arg3[%c0_58, %c0_59] : memref<7x256xf32, #tpu.memory_space<vmem>>, vector<1x256xf32>
    %69 = arith.mulf %67, %68 : vector<1x256xf32>
    %70 = arith.addf %24, %69 : vector<1x256xf32>
    %c0_60 = arith.constant 0 : index
    %c0_61 = arith.constant 0 : index
    %c1_62 = arith.constant 1 : index
    %71 = vector.load %arg7[%c0_60, %c0_61, %c1_62] : memref<2x7x262xf32, #tpu.memory_space<vmem>>, vector<1x7x256xf32>
    %72 = vector.shape_cast %71 : vector<1x7x256xf32> to vector<7x256xf32>
    %c0_63 = arith.constant 0 : index
    %c1_64 = arith.constant 1 : index
    %73 = vector.load %arg2[%c0_63, %c1_64] : memref<14x7xf32, #tpu.memory_space<vmem>>, vector<7x1xf32>
    %74 = vector.broadcast %73 : vector<7x1xf32> to vector<7x256xf32>
    %75 = arith.mulf %72, %74 : vector<7x256xf32>
    %cst_65 = arith.constant dense<0.000000e+00> : vector<256xf32>
    %76 = vector.multi_reduction <add>, %75, %cst_65 [0] : vector<7x256xf32> to vector<256xf32>
    %77 = vector.shape_cast %76 : vector<256xf32> to vector<1x256xf32>
    %c1_66 = arith.constant 1 : index
    %c0_67 = arith.constant 0 : index
    %78 = vector.load %arg3[%c1_66, %c0_67] : memref<7x256xf32, #tpu.memory_space<vmem>>, vector<1x256xf32>
    %79 = arith.mulf %77, %78 : vector<1x256xf32>
    %80 = arith.addf %25, %79 : vector<1x256xf32>
    %c0_68 = arith.constant 0 : index
    %c0_69 = arith.constant 0 : index
    %c2_70 = arith.constant 2 : index
    %81 = vector.load %arg7[%c0_68, %c0_69, %c2_70] : memref<2x7x262xf32, #tpu.memory_space<vmem>>, vector<1x7x256xf32>
    %82 = vector.shape_cast %81 : vector<1x7x256xf32> to vector<7x256xf32>
    %c0_71 = arith.constant 0 : index
    %c2_72 = arith.constant 2 : index
    %83 = vector.load %arg2[%c0_71, %c2_72] : memref<14x7xf32, #tpu.memory_space<vmem>>, vector<7x1xf32>
    %84 = vector.broadcast %83 : vector<7x1xf32> to vector<7x256xf32>
    %85 = arith.mulf %82, %84 : vector<7x256xf32>
    %cst_73 = arith.constant dense<0.000000e+00> : vector<256xf32>
    %86 = vector.multi_reduction <add>, %85, %cst_73 [0] : vector<7x256xf32> to vector<256xf32>
    %87 = vector.shape_cast %86 : vector<256xf32> to vector<1x256xf32>
    %c2_74 = arith.constant 2 : index
    %c0_75 = arith.constant 0 : index
    %88 = vector.load %arg3[%c2_74, %c0_75] : memref<7x256xf32, #tpu.memory_space<vmem>>, vector<1x256xf32>
    %89 = arith.mulf %87, %88 : vector<1x256xf32>
    %90 = arith.addf %70, %89 : vector<1x256xf32>
    %c0_76 = arith.constant 0 : index
    %c0_77 = arith.constant 0 : index
    %c3_78 = arith.constant 3 : index
    %91 = vector.load %arg7[%c0_76, %c0_77, %c3_78] : memref<2x7x262xf32, #tpu.memory_space<vmem>>, vector<1x7x256xf32>
    %92 = vector.shape_cast %91 : vector<1x7x256xf32> to vector<7x256xf32>
    %c0_79 = arith.constant 0 : index
    %c3_80 = arith.constant 3 : index
    %93 = vector.load %arg2[%c0_79, %c3_80] : memref<14x7xf32, #tpu.memory_space<vmem>>, vector<7x1xf32>
    %94 = vector.broadcast %93 : vector<7x1xf32> to vector<7x256xf32>
    %95 = arith.mulf %92, %94 : vector<7x256xf32>
    %cst_81 = arith.constant dense<0.000000e+00> : vector<256xf32>
    %96 = vector.multi_reduction <add>, %95, %cst_81 [0] : vector<7x256xf32> to vector<256xf32>
    %97 = vector.shape_cast %96 : vector<256xf32> to vector<1x256xf32>
    %c3_82 = arith.constant 3 : index
    %c0_83 = arith.constant 0 : index
    %98 = vector.load %arg3[%c3_82, %c0_83] : memref<7x256xf32, #tpu.memory_space<vmem>>, vector<1x256xf32>
    %99 = arith.mulf %97, %98 : vector<1x256xf32>
    %100 = arith.addf %80, %99 : vector<1x256xf32>
    %c0_84 = arith.constant 0 : index
    %c0_85 = arith.constant 0 : index
    %c4_86 = arith.constant 4 : index
    %101 = vector.load %arg7[%c0_84, %c0_85, %c4_86] : memref<2x7x262xf32, #tpu.memory_space<vmem>>, vector<1x7x256xf32>
    %102 = vector.shape_cast %101 : vector<1x7x256xf32> to vector<7x256xf32>
    %c0_87 = arith.constant 0 : index
    %c4_88 = arith.constant 4 : index
    %103 = vector.load %arg2[%c0_87, %c4_88] : memref<14x7xf32, #tpu.memory_space<vmem>>, vector<7x1xf32>
    %104 = vector.broadcast %103 : vector<7x1xf32> to vector<7x256xf32>
    %105 = arith.mulf %102, %104 : vector<7x256xf32>
    %cst_89 = arith.constant dense<0.000000e+00> : vector<256xf32>
    %106 = vector.multi_reduction <add>, %105, %cst_89 [0] : vector<7x256xf32> to vector<256xf32>
    %107 = vector.shape_cast %106 : vector<256xf32> to vector<1x256xf32>
    %c4_90 = arith.constant 4 : index
    %c0_91 = arith.constant 0 : index
    %108 = vector.load %arg3[%c4_90, %c0_91] : memref<7x256xf32, #tpu.memory_space<vmem>>, vector<1x256xf32>
    %109 = arith.mulf %107, %108 : vector<1x256xf32>
    %110 = arith.addf %90, %109 : vector<1x256xf32>
    %c0_92 = arith.constant 0 : index
    %c0_93 = arith.constant 0 : index
    %c5_94 = arith.constant 5 : index
    %111 = vector.load %arg7[%c0_92, %c0_93, %c5_94] : memref<2x7x262xf32, #tpu.memory_space<vmem>>, vector<1x7x256xf32>
    %112 = vector.shape_cast %111 : vector<1x7x256xf32> to vector<7x256xf32>
    %c0_95 = arith.constant 0 : index
    %c5_96 = arith.constant 5 : index
    %113 = vector.load %arg2[%c0_95, %c5_96] : memref<14x7xf32, #tpu.memory_space<vmem>>, vector<7x1xf32>
    %114 = vector.broadcast %113 : vector<7x1xf32> to vector<7x256xf32>
    %115 = arith.mulf %112, %114 : vector<7x256xf32>
    %cst_97 = arith.constant dense<0.000000e+00> : vector<256xf32>
    %116 = vector.multi_reduction <add>, %115, %cst_97 [0] : vector<7x256xf32> to vector<256xf32>
    %117 = vector.shape_cast %116 : vector<256xf32> to vector<1x256xf32>
    %c5_98 = arith.constant 5 : index
    %c0_99 = arith.constant 0 : index
    %118 = vector.load %arg3[%c5_98, %c0_99] : memref<7x256xf32, #tpu.memory_space<vmem>>, vector<1x256xf32>
    %119 = arith.mulf %117, %118 : vector<1x256xf32>
    %120 = arith.addf %100, %119 : vector<1x256xf32>
    %c0_100 = arith.constant 0 : index
    %c0_101 = arith.constant 0 : index
    %c6_102 = arith.constant 6 : index
    %121 = vector.load %arg7[%c0_100, %c0_101, %c6_102] : memref<2x7x262xf32, #tpu.memory_space<vmem>>, vector<1x7x256xf32>
    %122 = vector.shape_cast %121 : vector<1x7x256xf32> to vector<7x256xf32>
    %c0_103 = arith.constant 0 : index
    %c6_104 = arith.constant 6 : index
    %123 = vector.load %arg2[%c0_103, %c6_104] : memref<14x7xf32, #tpu.memory_space<vmem>>, vector<7x1xf32>
    %124 = vector.broadcast %123 : vector<7x1xf32> to vector<7x256xf32>
    %125 = arith.mulf %122, %124 : vector<7x256xf32>
    %cst_105 = arith.constant dense<0.000000e+00> : vector<256xf32>
    %126 = vector.multi_reduction <add>, %125, %cst_105 [0] : vector<7x256xf32> to vector<256xf32>
    %127 = vector.shape_cast %126 : vector<256xf32> to vector<1x256xf32>
    %c6_106 = arith.constant 6 : index
    %c0_107 = arith.constant 0 : index
    %128 = vector.load %arg3[%c6_106, %c0_107] : memref<7x256xf32, #tpu.memory_space<vmem>>, vector<1x256xf32>
    %129 = arith.mulf %127, %128 : vector<1x256xf32>
    %130 = arith.addf %110, %129 : vector<1x256xf32>
    %c1_108 = arith.constant 1 : index
    %c0_109 = arith.constant 0 : index
    %c0_110 = arith.constant 0 : index
    %131 = vector.load %arg6[%c1_108, %c0_109, %c0_110] : memref<2x1x358xf32, #tpu.memory_space<vmem>>, vector<1x1x262xf32>
    %132 = vector.shape_cast %131 : vector<1x1x262xf32> to vector<1x262xf32>
    %c1_111 = arith.constant 1 : index
    %c0_112 = arith.constant 0 : index
    %c0_113 = arith.constant 0 : index
    %133 = vector.load %arg7[%c1_111, %c0_112, %c0_113] : memref<2x7x262xf32, #tpu.memory_space<vmem>>, vector<1x1x262xf32>
    %134 = vector.shape_cast %133 : vector<1x1x262xf32> to vector<1x262xf32>
    %135 = vector.shape_cast %132 : vector<1x262xf32> to vector<1x1x262xf32>
    tpu.vector_store %arg7[%c1_111, %c0_112, %c0_113], %135 {strides = array<i32>} : memref<2x7x262xf32, #tpu.memory_space<vmem>>, vector<1x1x262xf32>,
    %c1_114 = arith.constant 1 : index
    %c0_115 = arith.constant 0 : index
    %c16_116 = arith.constant 16 : index
    %136 = vector.load %arg6[%c1_114, %c0_115, %c16_116] : memref<2x1x358xf32, #tpu.memory_space<vmem>>, vector<1x1x262xf32>
    %137 = vector.shape_cast %136 : vector<1x1x262xf32> to vector<1x262xf32>
    %c1_117 = arith.constant 1 : index
    %c1_118 = arith.constant 1 : index
    %c0_119 = arith.constant 0 : index
    %138 = vector.load %arg7[%c1_117, %c1_118, %c0_119] : memref<2x7x262xf32, #tpu.memory_space<vmem>>, vector<1x1x262xf32>
    %139 = vector.shape_cast %138 : vector<1x1x262xf32> to vector<1x262xf32>
    %140 = vector.shape_cast %137 : vector<1x262xf32> to vector<1x1x262xf32>
    tpu.vector_store %arg7[%c1_117, %c1_118, %c0_119], %140 {strides = array<i32>} : memref<2x7x262xf32, #tpu.memory_space<vmem>>, vector<1x1x262xf32>,
    %c1_120 = arith.constant 1 : index
    %c0_121 = arith.constant 0 : index
    %c32_122 = arith.constant 32 : index
    %141 = vector.load %arg6[%c1_120, %c0_121, %c32_122] : memref<2x1x358xf32, #tpu.memory_space<vmem>>, vector<1x1x262xf32>
    %142 = vector.shape_cast %141 : vector<1x1x262xf32> to vector<1x262xf32>
    %c1_123 = arith.constant 1 : index
    %c2_124 = arith.constant 2 : index
    %c0_125 = arith.constant 0 : index
    %143 = vector.load %arg7[%c1_123, %c2_124, %c0_125] : memref<2x7x262xf32, #tpu.memory_space<vmem>>, vector<1x1x262xf32>
    %144 = vector.shape_cast %143 : vector<1x1x262xf32> to vector<1x262xf32>
    %145 = vector.shape_cast %142 : vector<1x262xf32> to vector<1x1x262xf32>
    tpu.vector_store %arg7[%c1_123, %c2_124, %c0_125], %145 {strides = array<i32>} : memref<2x7x262xf32, #tpu.memory_space<vmem>>, vector<1x1x262xf32>,
    %c1_126 = arith.constant 1 : index
    %c0_127 = arith.constant 0 : index
    %c48_128 = arith.constant 48 : index
    %146 = vector.load %arg6[%c1_126, %c0_127, %c48_128] : memref<2x1x358xf32, #tpu.memory_space<vmem>>, vector<1x1x262xf32>
    %147 = vector.shape_cast %146 : vector<1x1x262xf32> to vector<1x262xf32>
    %c1_129 = arith.constant 1 : index
    %c3_130 = arith.constant 3 : index
    %c0_131 = arith.constant 0 : index
    %148 = vector.load %arg7[%c1_129, %c3_130, %c0_131] : memref<2x7x262xf32, #tpu.memory_space<vmem>>, vector<1x1x262xf32>
    %149 = vector.shape_cast %148 : vector<1x1x262xf32> to vector<1x262xf32>
    %150 = vector.shape_cast %147 : vector<1x262xf32> to vector<1x1x262xf32>
    tpu.vector_store %arg7[%c1_129, %c3_130, %c0_131], %150 {strides = array<i32>} : memref<2x7x262xf32, #tpu.memory_space<vmem>>, vector<1x1x262xf32>,
    %c1_132 = arith.constant 1 : index
    %c0_133 = arith.constant 0 : index
    %c64_134 = arith.constant 64 : index
    %151 = vector.load %arg6[%c1_132, %c0_133, %c64_134] : memref<2x1x358xf32, #tpu.memory_space<vmem>>, vector<1x1x262xf32>
    %152 = vector.shape_cast %151 : vector<1x1x262xf32> to vector<1x262xf32>
    %c1_135 = arith.constant 1 : index
    %c4_136 = arith.constant 4 : index
    %c0_137 = arith.constant 0 : index
    %153 = vector.load %arg7[%c1_135, %c4_136, %c0_137] : memref<2x7x262xf32, #tpu.memory_space<vmem>>, vector<1x1x262xf32>
    %154 = vector.shape_cast %153 : vector<1x1x262xf32> to vector<1x262xf32>
    %155 = vector.shape_cast %152 : vector<1x262xf32> to vector<1x1x262xf32>
    tpu.vector_store %arg7[%c1_135, %c4_136, %c0_137], %155 {strides = array<i32>} : memref<2x7x262xf32, #tpu.memory_space<vmem>>, vector<1x1x262xf32>,
    %c1_138 = arith.constant 1 : index
    %c0_139 = arith.constant 0 : index
    %c80_140 = arith.constant 80 : index
    %156 = vector.load %arg6[%c1_138, %c0_139, %c80_140] : memref<2x1x358xf32, #tpu.memory_space<vmem>>, vector<1x1x262xf32>
    %157 = vector.shape_cast %156 : vector<1x1x262xf32> to vector<1x262xf32>
    %c1_141 = arith.constant 1 : index
    %c5_142 = arith.constant 5 : index
    %c0_143 = arith.constant 0 : index
    %158 = vector.load %arg7[%c1_141, %c5_142, %c0_143] : memref<2x7x262xf32, #tpu.memory_space<vmem>>, vector<1x1x262xf32>
    %159 = vector.shape_cast %158 : vector<1x1x262xf32> to vector<1x262xf32>
    %160 = vector.shape_cast %157 : vector<1x262xf32> to vector<1x1x262xf32>
    tpu.vector_store %arg7[%c1_141, %c5_142, %c0_143], %160 {strides = array<i32>} : memref<2x7x262xf32, #tpu.memory_space<vmem>>, vector<1x1x262xf32>,
    %c1_144 = arith.constant 1 : index
    %c0_145 = arith.constant 0 : index
    %c96_146 = arith.constant 96 : index
    %161 = vector.load %arg6[%c1_144, %c0_145, %c96_146] : memref<2x1x358xf32, #tpu.memory_space<vmem>>, vector<1x1x262xf32>
    %162 = vector.shape_cast %161 : vector<1x1x262xf32> to vector<1x262xf32>
    %c1_147 = arith.constant 1 : index
    %c6_148 = arith.constant 6 : index
    %c0_149 = arith.constant 0 : index
    %163 = vector.load %arg7[%c1_147, %c6_148, %c0_149] : memref<2x7x262xf32, #tpu.memory_space<vmem>>, vector<1x1x262xf32>
    %164 = vector.shape_cast %163 : vector<1x1x262xf32> to vector<1x262xf32>
    %165 = vector.shape_cast %162 : vector<1x262xf32> to vector<1x1x262xf32>
    tpu.vector_store %arg7[%c1_147, %c6_148, %c0_149], %165 {strides = array<i32>} : memref<2x7x262xf32, #tpu.memory_space<vmem>>, vector<1x1x262xf32>,
    %c1_150 = arith.constant 1 : index
    %c0_151 = arith.constant 0 : index
    %c0_152 = arith.constant 0 : index
    %166 = vector.load %arg7[%c1_150, %c0_151, %c0_152] : memref<2x7x262xf32, #tpu.memory_space<vmem>>, vector<1x7x256xf32>
    %167 = vector.shape_cast %166 : vector<1x7x256xf32> to vector<7x256xf32>
    %c7 = arith.constant 7 : index
    %c0_153 = arith.constant 0 : index
    %168 = vector.load %arg2[%c7, %c0_153] : memref<14x7xf32, #tpu.memory_space<vmem>>, vector<7x1xf32>
    %169 = vector.broadcast %168 : vector<7x1xf32> to vector<7x256xf32>
    %170 = arith.mulf %167, %169 : vector<7x256xf32>
    %cst_154 = arith.constant dense<0.000000e+00> : vector<256xf32>
    %171 = vector.multi_reduction <add>, %170, %cst_154 [0] : vector<7x256xf32> to vector<256xf32>
    %172 = vector.shape_cast %171 : vector<256xf32> to vector<1x256xf32>
    %c0_155 = arith.constant 0 : index
    %c0_156 = arith.constant 0 : index
    %173 = vector.load %arg3[%c0_155, %c0_156] : memref<7x256xf32, #tpu.memory_space<vmem>>, vector<1x256xf32>
    %174 = arith.mulf %172, %173 : vector<1x256xf32>
    %175 = arith.addf %120, %174 : vector<1x256xf32>
    %c1_157 = arith.constant 1 : index
    %c0_158 = arith.constant 0 : index
    %c1_159 = arith.constant 1 : index
    %176 = vector.load %arg7[%c1_157, %c0_158, %c1_159] : memref<2x7x262xf32, #tpu.memory_space<vmem>>, vector<1x7x256xf32>
    %177 = vector.shape_cast %176 : vector<1x7x256xf32> to vector<7x256xf32>
    %c7_160 = arith.constant 7 : index
    %c1_161 = arith.constant 1 : index
    %178 = vector.load %arg2[%c7_160, %c1_161] : memref<14x7xf32, #tpu.memory_space<vmem>>, vector<7x1xf32>
    %179 = vector.broadcast %178 : vector<7x1xf32> to vector<7x256xf32>
    %180 = arith.mulf %177, %179 : vector<7x256xf32>
    %cst_162 = arith.constant dense<0.000000e+00> : vector<256xf32>
    %181 = vector.multi_reduction <add>, %180, %cst_162 [0] : vector<7x256xf32> to vector<256xf32>
    %182 = vector.shape_cast %181 : vector<256xf32> to vector<1x256xf32>
    %c1_163 = arith.constant 1 : index
    %c0_164 = arith.constant 0 : index
    %183 = vector.load %arg3[%c1_163, %c0_164] : memref<7x256xf32, #tpu.memory_space<vmem>>, vector<1x256xf32>
    %184 = arith.mulf %182, %183 : vector<1x256xf32>
    %185 = arith.addf %130, %184 : vector<1x256xf32>
    %c1_165 = arith.constant 1 : index
    %c0_166 = arith.constant 0 : index
    %c2_167 = arith.constant 2 : index
    %186 = vector.load %arg7[%c1_165, %c0_166, %c2_167] : memref<2x7x262xf32, #tpu.memory_space<vmem>>, vector<1x7x256xf32>
    %187 = vector.shape_cast %186 : vector<1x7x256xf32> to vector<7x256xf32>
    %c7_168 = arith.constant 7 : index
    %c2_169 = arith.constant 2 : index
    %188 = vector.load %arg2[%c7_168, %c2_169] : memref<14x7xf32, #tpu.memory_space<vmem>>, vector<7x1xf32>
    %189 = vector.broadcast %188 : vector<7x1xf32> to vector<7x256xf32>
    %190 = arith.mulf %187, %189 : vector<7x256xf32>
    %cst_170 = arith.constant dense<0.000000e+00> : vector<256xf32>
    %191 = vector.multi_reduction <add>, %190, %cst_170 [0] : vector<7x256xf32> to vector<256xf32>
    %192 = vector.shape_cast %191 : vector<256xf32> to vector<1x256xf32>
    %c2_171 = arith.constant 2 : index
    %c0_172 = arith.constant 0 : index
    %193 = vector.load %arg3[%c2_171, %c0_172] : memref<7x256xf32, #tpu.memory_space<vmem>>, vector<1x256xf32>
    %194 = arith.mulf %192, %193 : vector<1x256xf32>
    %195 = arith.addf %175, %194 : vector<1x256xf32>
    %c1_173 = arith.constant 1 : index
    %c0_174 = arith.constant 0 : index
    %c3_175 = arith.constant 3 : index
    %196 = vector.load %arg7[%c1_173, %c0_174, %c3_175] : memref<2x7x262xf32, #tpu.memory_space<vmem>>, vector<1x7x256xf32>
    %197 = vector.shape_cast %196 : vector<1x7x256xf32> to vector<7x256xf32>
    %c7_176 = arith.constant 7 : index
    %c3_177 = arith.constant 3 : index
    %198 = vector.load %arg2[%c7_176, %c3_177] : memref<14x7xf32, #tpu.memory_space<vmem>>, vector<7x1xf32>
    %199 = vector.broadcast %198 : vector<7x1xf32> to vector<7x256xf32>
    %200 = arith.mulf %197, %199 : vector<7x256xf32>
    %cst_178 = arith.constant dense<0.000000e+00> : vector<256xf32>
    %201 = vector.multi_reduction <add>, %200, %cst_178 [0] : vector<7x256xf32> to vector<256xf32>
    %202 = vector.shape_cast %201 : vector<256xf32> to vector<1x256xf32>
    %c3_179 = arith.constant 3 : index
    %c0_180 = arith.constant 0 : index
    %203 = vector.load %arg3[%c3_179, %c0_180] : memref<7x256xf32, #tpu.memory_space<vmem>>, vector<1x256xf32>
    %204 = arith.mulf %202, %203 : vector<1x256xf32>
    %205 = arith.addf %185, %204 : vector<1x256xf32>
    %c1_181 = arith.constant 1 : index
    %c0_182 = arith.constant 0 : index
    %c4_183 = arith.constant 4 : index
    %206 = vector.load %arg7[%c1_181, %c0_182, %c4_183] : memref<2x7x262xf32, #tpu.memory_space<vmem>>, vector<1x7x256xf32>
    %207 = vector.shape_cast %206 : vector<1x7x256xf32> to vector<7x256xf32>
    %c7_184 = arith.constant 7 : index
    %c4_185 = arith.constant 4 : index
    %208 = vector.load %arg2[%c7_184, %c4_185] : memref<14x7xf32, #tpu.memory_space<vmem>>, vector<7x1xf32>
    %209 = vector.broadcast %208 : vector<7x1xf32> to vector<7x256xf32>
    %210 = arith.mulf %207, %209 : vector<7x256xf32>
    %cst_186 = arith.constant dense<0.000000e+00> : vector<256xf32>
    %211 = vector.multi_reduction <add>, %210, %cst_186 [0] : vector<7x256xf32> to vector<256xf32>
    %212 = vector.shape_cast %211 : vector<256xf32> to vector<1x256xf32>
    %c4_187 = arith.constant 4 : index
    %c0_188 = arith.constant 0 : index
    %213 = vector.load %arg3[%c4_187, %c0_188] : memref<7x256xf32, #tpu.memory_space<vmem>>, vector<1x256xf32>
    %214 = arith.mulf %212, %213 : vector<1x256xf32>
    %215 = arith.addf %195, %214 : vector<1x256xf32>
    %c1_189 = arith.constant 1 : index
    %c0_190 = arith.constant 0 : index
    %c5_191 = arith.constant 5 : index
    %216 = vector.load %arg7[%c1_189, %c0_190, %c5_191] : memref<2x7x262xf32, #tpu.memory_space<vmem>>, vector<1x7x256xf32>
    %217 = vector.shape_cast %216 : vector<1x7x256xf32> to vector<7x256xf32>
    %c7_192 = arith.constant 7 : index
    %c5_193 = arith.constant 5 : index
    %218 = vector.load %arg2[%c7_192, %c5_193] : memref<14x7xf32, #tpu.memory_space<vmem>>, vector<7x1xf32>
    %219 = vector.broadcast %218 : vector<7x1xf32> to vector<7x256xf32>
    %220 = arith.mulf %217, %219 : vector<7x256xf32>
    %cst_194 = arith.constant dense<0.000000e+00> : vector<256xf32>
    %221 = vector.multi_reduction <add>, %220, %cst_194 [0] : vector<7x256xf32> to vector<256xf32>
    %222 = vector.shape_cast %221 : vector<256xf32> to vector<1x256xf32>
    %c5_195 = arith.constant 5 : index
    %c0_196 = arith.constant 0 : index
    %223 = vector.load %arg3[%c5_195, %c0_196] : memref<7x256xf32, #tpu.memory_space<vmem>>, vector<1x256xf32>
    %224 = arith.mulf %222, %223 : vector<1x256xf32>
    %225 = arith.addf %205, %224 : vector<1x256xf32>
    %c1_197 = arith.constant 1 : index
    %c0_198 = arith.constant 0 : index
    %c6_199 = arith.constant 6 : index
    %226 = vector.load %arg7[%c1_197, %c0_198, %c6_199] : memref<2x7x262xf32, #tpu.memory_space<vmem>>, vector<1x7x256xf32>
    %227 = vector.shape_cast %226 : vector<1x7x256xf32> to vector<7x256xf32>
    %c7_200 = arith.constant 7 : index
    %c6_201 = arith.constant 6 : index
    %228 = vector.load %arg2[%c7_200, %c6_201] : memref<14x7xf32, #tpu.memory_space<vmem>>, vector<7x1xf32>
    %229 = vector.broadcast %228 : vector<7x1xf32> to vector<7x256xf32>
    %230 = arith.mulf %227, %229 : vector<7x256xf32>
    %cst_202 = arith.constant dense<0.000000e+00> : vector<256xf32>
    %231 = vector.multi_reduction <add>, %230, %cst_202 [0] : vector<7x256xf32> to vector<256xf32>
    %232 = vector.shape_cast %231 : vector<256xf32> to vector<1x256xf32>
    %c6_203 = arith.constant 6 : index
    %c0_204 = arith.constant 0 : index
    %233 = vector.load %arg3[%c6_203, %c0_204] : memref<7x256xf32, #tpu.memory_space<vmem>>, vector<1x256xf32>
    %234 = arith.mulf %232, %233 : vector<1x256xf32>
    %235 = arith.addf %215, %234 : vector<1x256xf32>
    %236 = arith.addf %225, %235 : vector<1x256xf32>
    %c0_205 = arith.constant 0 : index
    %237 = memref.load %arg1[%c0_205] : memref<2xf32, #tpu.memory_space<smem>>
    %238 = vector.broadcast %237 : f32 to vector<1x256xf32>
    %239 = arith.mulf %236, %238 : vector<1x256xf32>
    %c1_206 = arith.constant 1 : index
    %240 = memref.load %arg1[%c1_206] : memref<2xf32, #tpu.memory_space<smem>>
    %241 = vector.broadcast %240 : f32 to vector<1x256xf32>
    %242 = arith.addf %239, %241 : vector<1x256xf32>
    %243 = arith.negf %242 : vector<1x256xf32>
    %244 = math.exp %243 : vector<1x256xf32>
    %cst_207 = arith.constant 1.000000e+00 : f32
    %245 = vector.broadcast %cst_207 : f32 to vector<1x256xf32>
    %246 = arith.addf %245, %244 : vector<1x256xf32>
    %247 = arith.divf %245, %246 : vector<1x256xf32>
    %c0_208 = arith.constant 0 : index
    %c0_209 = arith.constant 0 : index
    %c0_210 = arith.constant 0 : index
    %248 = vector.load %arg4[%c0_208, %c0_209, %c0_210] : memref<1x4x256xf32, #tpu.memory_space<vmem>>, vector<1x4x256xf32>
    %249 = vector.shape_cast %248 : vector<1x4x256xf32> to vector<4x256xf32>
    %250 = vector.broadcast %247 : vector<1x256xf32> to vector<4x256xf32>
    %251 = arith.mulf %249, %250 : vector<4x256xf32>
    %c0_211 = arith.constant 0 : index
    %c0_212 = arith.constant 0 : index
    %c0_213 = arith.constant 0 : index
    %252 = vector.load %arg5[%c0_211, %c0_212, %c0_213] : memref<1x4x256xf32, #tpu.memory_space<vmem>>, vector<1x4x256xf32>
    %253 = vector.shape_cast %252 : vector<1x4x256xf32> to vector<4x256xf32>
    %254 = vector.shape_cast %251 : vector<4x256xf32> to vector<1x4x256xf32>
    tpu.vector_store %arg5[%c0_211, %c0_212, %c0_213], %254 {strides = array<i32>} : memref<1x4x256xf32, #tpu.memory_space<vmem>>, vector<1x4x256xf32>,
    return
  }
  func.func @transform_0(%arg0: i32, %arg1: memref<2xf32, #tpu.memory_space<smem>>) -> (i32, i32) {
    %c0_i32 = arith.constant 0 : i32
    %c0_i32_0 = arith.constant 0 : i32
    %c0_i32_1 = arith.constant 0 : i32
    return %c0_i32, %c0_i32_0 : i32, i32
  }
  func.func @transform_1(%arg0: i32, %arg1: memref<2xf32, #tpu.memory_space<smem>>) -> (i32, i32) {
    %c0_i32 = arith.constant 0 : i32
    %c0_i32_0 = arith.constant 0 : i32
    %c0_i32_1 = arith.constant 0 : i32
    return %c0_i32, %c0_i32_0 : i32, i32
  }
  func.func @transform_2(%arg0: i32, %arg1: memref<2xf32, #tpu.memory_space<smem>>) -> (i32, i32, i32) {
    %c0_i32 = arith.constant 0 : i32
    %c0_i32_0 = arith.constant 0 : i32
    %c0_i32_1 = arith.constant 0 : i32
    return %arg0, %c0_i32, %c0_i32_0 : i32, i32, i32
  }
  func.func @transform_3(%arg0: i32, %arg1: memref<2xf32, #tpu.memory_space<smem>>) -> (i32, i32, i32) {
    %c0_i32 = arith.constant 0 : i32
    %c0_i32_0 = arith.constant 0 : i32
    %c0_i32_1 = arith.constant 0 : i32
    return %arg0, %c0_i32, %c0_i32_0 : i32, i32, i32
  }
}

</mosaic_0001>

<bundles_post_ra>
// kernel: tpu_custom_call.1
= control target key start
LH: loop header
LB: loop body
LE: loop exit
PB: predicated region body
PF: predicated region fallthrough
CT: control target
= control target key end

     0   :  { %s2256_s0 = inlined_call_operand.vmem [shape: f32[2], index: 0, kind: input, shape index: {}]   ;;  %s2257_s1 = inlined_call_operand.vmem [shape: f32[14,7], index: 1, kind: input, shape index: {}]   ;;  %s2258_s2 = inlined_call_operand.vmem [shape: f32[7,256], index: 2, kind: input, shape index: {}]   ;;  %s2259_s3 = inlined_call_operand.vmem [shape: f32[2,4,256], index: 3, kind: input, shape index: {}]   ;;  %s2260_s4 = inlined_call_operand.hbm [shape: f32[2,4,256], index: 4, kind: output, shape index: {}]  }
   0x1   :  { %s9_s17 = sshll.u32 %s2256_s0, 4  ;;  %s10_s17 = int_to_ptr.vmem [resolvable:$true] %s9_s17 }
   0x2   :  { %s1497_s18 = scalar_lea.vmem %s10_s17, 16  ;;  %p1502_p1 = scmp.lt.s32.totalorder %s10_s17, %s10_s17 }
   0x3   :  { %p1498_p0 = scmp.ne.s32.totalorder %s10_s17, %s1497_s18  ;;  %p1503_p2 = scmp.lt.s32.totalorder %s1497_s18, %s1497_s18 }
   0x5   :  { %p1504_p3 = por %p1503_p2, %p1502_p1 }
   0x7   :  { %p1505_p4 = pnand %p1504_p3, %p1498_p0 }
   0x9   :  { %1508 = shalt.err (!%p1505_p4)  }
   0xa   :  { %s1575_s19 = smov [#allocation5]  }
   0xb   :  { %12 = dma.vmem_to_smem %s10_s17, 16, %s1575_s19, [#allocation4] }
   0xc   :  { %1553 = dma.done.wait [#allocation4], 16 }
   0xd   :  { %1554 = vsyncadd [#allocation4], 4294967280 }
   0xe   :  { %14 = sfence }
   0xf   :  { %15 = vsyncpa [#allocation7], 0 }
  0x10   :  { %17 = vsyncpa [#allocation7 + $0x1], 0  ;;  %s1632_s20 = smov 0   ;;  %s1634_s21 = smov 0  }
  0x11   :  { %s1636_s0 = smov 0   ;;  %s1638_s22 = smov 0  }
  0x12 LB: > { %s1653_s23 = sadd.s32 4294967295, %s1573_s22   ;;  %s1374_s24 = sadd.s32 4294967294, %s1573_s22   ;;  %s1573_s22 = sphi %s1638_s22, %s2271_s22   ;;  %s1569_s0 = sphi %s1636_s0, %s2270_s0   ;;  %s1565_s21 = sphi %s1634_s21, %s2269_s21   ;;  %s1561_s20 = sphi %s1632_s20, %s2268_s20  }
  0x13   : > { %s1657_s25 = sadd.s32 1, %s1573_s22   ;;  %s98_s26 = sadd.s32 1, %s1569_s0 }
  0x14   : > { %s95_s27 = ssub.s32 %s1573_s22, %s1657_s25  ;;  %p108_p5 = scmp.ne.s32.totalorder %s1569_s0, %s1565_s21 }
  0x15   : > { %p96_p6 = scmp.eq.s32.totalorder %s95_s27, 0  ;;  %p109_p7 = scmp.eq.s32.totalorder %s1653_s23, 1 }
  0x16   : > { %p114_p8 = scmp.ne.s32.totalorder %s1565_s21, %s1561_s20  ;;  %p115_p9 = scmp.eq.s32.totalorder %s1374_s24, 1 }
  0x17   : > { %s1668_s28 = scalar_select %p96_p6, %s1569_s0, %s98_s26  }
  0x18   : > { %p1670_p10 = por %p109_p7, %p108_p5  ;;  %p1674_p11 = por %p115_p9, %p114_p8 }
  0x19   : > { %p1377_p12 = scmp.ge.s32.totalorder %s1573_s22, 1  ;;  %p147_p13 = scmp.lt.s32.totalorder %s1573_s22, 3 }
  0x1b   : > { %p148_p0 = pnand %p1377_p12, %p147_p13 }
  0x1c   : > { %p171_p1 = scmp.lt.s32.totalorder (!%p148_p0), %s1653_s23, 1  ;;  %v1684_v0 = vld [vmem:[%s2257_s1 + $0x7] sm:$0x7f] (!%p148_p0)  ;;  %v190_v1 = vlaneseq (!%p148_p0)  ;;  %v1576_v2 = vmov (!%p148_p0), 3   ;;  %v1577_v3 = vmov (!%p148_p0), 0   ;;  %v1578_v4 = vmov (!%p148_p0), 0.0  }
  0x1d   : > { %151 = sbr.rel (%p148_p0) target bundleno = 671 (0x29f), region = 32  ;;  %1473 = vset.pattern.permute.xlu0 (!%p148_p0), %v1576_v2  ;;  %1475 = vset.pattern.permute.xlu1 (!%p148_p0), %v1577_v3  ;;  %v1579_v8 = vmov (!%p148_p0), 2   ;;  %v1386_v16 = vld [vmem:[%s2258_s2 + $0x3] ss:$8 sm:$0x3] (!%p148_p0)  ;;  %v1580_v19 = vmov (!%p148_p0), 6  }
  0x1e   : > { %802 = vperm.xlu1 (!%p148_p0), %1475, %v1684_v0   ;;  %vm192_vm0 = vcmp.lt.s32.totalorder (!%p148_p0), %v190_v1, 358  ;;  %v314_v5 = vshrl.u32 (!%p148_p0), %v190_v1, 7  ;;  %s1581_s14 = smov (!%p148_p0), 51   ;;  %v1388_v22 = vld [vmem:[%s2258_s2 + $0x5] ss:$8 sm:$0x3] (!%p148_p0) }
  0x1f   : > { %194 = vst.msk [vmem:[#allocation2] sm:$0x7] (!%p148_p0), %vm192_vm0, %v1578_v4  ;;  %195 = vst.msk [vmem:[#allocation2 + $0x3] sm:$0x7] (!%p148_p0), %vm192_vm0, %v1578_v4  ;;  %s1582_s17 = smov (!%p148_p0), 3   ;;  %s1583_s24 = smov (!%p148_p0), 5  }
  0x20   : > { %v1702_v13 = vsub.s32 (!%p148_p0), 0, %v314_v5  ;;  %v1718_v24 = vld [vmem:[%s2257_s1] sm:$0x7f] (!%p148_p0)  ;;  %v1584_v25 = vmov (!%p148_p0), 5   ;;  %v1724_v26 = vsub.s32 (!%p148_p0), 1, %v314_v5  ;;  %v1585_v27 = vmov (!%p148_p0), 4  }
  0x21   : > { %v1586_v30 = vmov (!%p148_p0), 1   ;;  %vm203_vm1 = vcmp.ge.s32.totalorder (!%p148_p0), %v190_v1, 51  ;;  %vm204_vm2 = vcmp.lt.s32.totalorder (!%p148_p0), %v190_v1, 307  ;;  %vm200_vm3 = vcmask (!%p148_p0), 416768   ;;  %s1587_s26 = smov (!%p148_p0), 80   ;;  %s1588_s27 = smov (!%p148_p0), 112  }
  0x22   : > { %1476 = vset.pattern.permute.xlu1 (!%p148_p0), %v1579_v8  ;;  %v491_v20 = vrot.slane (!%p148_p0), %v1386_v16, %v1702_v13  ;;  %v630_v23 = vrot.slane (!%p148_p0), %v1388_v22, %v1702_v13  ;;  %v495_v28 = vrot.slane (!%p148_p0), %v1386_v16, %v1724_v26  ;;  %v634_v29 = vrot.slane (!%p148_p0), %v1388_v22, %v1724_v26  ;;  %vm205_vm4 = vmand (!%p148_p0), %vm203_vm1, %vm204_vm2  ;;  %s1589_s5 = smov (!%p148_p0), 48   ;;  %s1590_s6 = smov (!%p148_p0), 96   ;;  %v1391_v47 = vld [vmem:[%s2258_s2 + $0x2] ss:$8 sm:$0x3] (!%p148_p0) }
  0x23   : > { %917 = vperm.xlu1 (!%p148_p0), %1476, %v1684_v0   ;;  %vm1736_vm5 = vcmp.lt.s32.totalorder (!%p148_p0), %v190_v1, 262  ;;  %s1592_s10 = smov (!%p148_p0), 32   ;;  %v953_v49 = vrot.slane (!%p148_p0), %v1391_v47, %v1724_v26  ;;  %v1393_v50 = vld [vmem:[%s2258_s2 + $0x4] ss:$8 sm:$0x3] (!%p148_p0)  ;;  %s1594_s18 = smov (!%p148_p0), 4   ;;  %v949_v58 = vrot.slane (!%p148_p0), %v1391_v47, %v1702_v13 }
  0x24   : > { %s172_s7 = scalar_select %p171_p1, %s1653_s23, 1  ;;  %v1084_v52 = vrot.slane %v1393_v50, %v1724_v26  ;;  %v1395_v53 = vld [vmem:[%s2258_s2 + $0x6] ss:$8 sm:$0x3]  ;;  %v1080_v60 = vrot.slane %v1393_v50, %v1702_v13  ;;  %vm225_vm6 = vcmask 916480   ;;  %vm247_vm7 = vcmask 654336  }
  0x25   : > { %v1215_v55 = vrot.slane %v1395_v53, %v1724_v26  ;;  %s1595_s19 = smov 6   ;;  %v1384_v59 = vld [vmem:[%s2258_s2 + $0x1] ss:$8 sm:$0x3]  ;;  %v1211_v63 = vrot.slane %v1395_v53, %v1702_v13  ;;  %vm236_vm8 = vcmask 785408   ;;  %vm269_vm9 = vcmask 392192  }
  0x26   : > { %s1404_s8 = sshll.u32 %s172_s7, 3  ;;  %s1591_s7 = smov 64   ;;  %v366_v61 = vrot.slane %v1384_v59, %v1702_v13  ;;  %v1385_v62 = vld [vmem:[%s2258_s2 + $0x2] ss:$8 sm:$0x3]  ;;  %vm258_vm10 = vcmask 523264  }
  0x27   : > { %s1695_s11 = scalar_lea.vmem %s2259_s3, %s1404_s8  ;;  %1478 = vset.pattern.permute.xlu1 %v1580_v19  ;;  %v422_v1 = vrot.slane %v1385_v62, %v1702_v13  ;;  %v1387_v4 = vld [vmem:[%s2258_s2 + $0x4] ss:$8 sm:$0x3]  ;;  %v426_v16 = vrot.slane %v1385_v62, %v1724_v26  ;;  %vm280_vm11 = vcmask 261120   ;;  %vm296_vm12 = vcmask 1046528   ;;  %s1259_s15 = sld [smem:[#allocation5]] }
  0x28   : > { %v176_v6 = vld [vmem:[%s1695_s11] ss:$4 sm:$0x3]  ;;  %v1381_v7 = vld [vmem:[%s1695_s11 + $0x1] ss:$4 sm:$0x3]  ;;  %1179 = vperm.xlu1 %1478, %v1684_v0   ;;  %v565_v5 = vrot.slane %v1387_v4, %v1724_v26 }
  0x29   : > { %v179_v9 = vmax.f32 %v176_v6, %v1381_v7  ;;  %v180_v10 = vadd.f32 %v1381_v7, %v176_v6  ;;  %v1382_v11 = vld [vmem:[%s1695_s11 + $0x2] ss:$4 sm:$0x3]  ;;  %v1383_v12 = vld [vmem:[%s1695_s11 + $0x3] ss:$4 sm:$0x3] }
  0x2a   : > { %v1389_v6 = vld [vmem:[%s2258_s2 + $0x6] ss:$8 sm:$0x3]  ;;  %vm462_vm13 = vcmask 1046552   ;;  %vm601_vm14 = vcmask 1046568   ;;  %vm477_vm15 = vcmask 22528  }
  0x2b   : > { %v183_v14 = vmax.f32 %v179_v9, %v1382_v11  ;;  %v184_v15 = vadd.f32 %v1382_v11, %v180_v10  ;;  %v700_v7 = vrot.slane %v1389_v6, %v1702_v13  ;;  %v1392_v10 = vld [vmem:[%s2258_s2 + $0x3] ss:$8 sm:$0x3]  ;;  %vm616_vm0 = vcmask 38912   ;;  %s1396_s16 = sld [smem:[#allocation5 + $0x1]] }
  0x2c   : > { %496 = vrot.lane.b32.xlu1 %v491_v20, %s1582_s17  ;;  %v1019_v11 = vrot.slane %v1392_v10, %v1724_v26  ;;  %vm500_vm1 = vcmask 23552   ;;  %vm408_vm2 = vcmask 14336  }
  0x2d   : > { %v187_v17 = vmax.f32 %v183_v14, %v1383_v12  ;;  %v188_v18 = vadd.f32 %v1383_v12, %v184_v15  ;;  %1479 = vset.pattern.permute.xlu1 %v1586_v30  ;;  %v1394_v12 = vld [vmem:[%s2258_s2 + $0x5] ss:$8 sm:$0x3]  ;;  %v370_v15 = vrot.slane %v1384_v59, %v1724_v26 }
  0x2e   : > { %v1146_v14 = vrot.slane %v1394_v12, %v1702_v13  ;;  %v1150_v20 = vrot.slane %v1394_v12, %v1724_v26 }
  0x2f   : > { %197 = vrot.lane.b32.xlu0 %v187_v17, %s1581_s14  ;;  %v189_v21 = vmul.f32 0.25, %v188_v18  ;;  %v704_v17 = vrot.slane %v1389_v6, %v1724_v26 }
  0x30   : > { %635 = vrot.lane.b32.xlu1 %v630_v23, %s1583_s24 }
  0x33   : > { %208 = vrot.lane.b32.xlu0 %v189_v21, %s1581_s14  ;;  %s1593_s14 = smov 2  }
  0x37   : > { %456 = vperm.xlu0 %1473, %v1718_v24  }
  0x3b   : > { %1474 = vset.pattern.permute.xlu0 %v1584_v25 }
  0x3c   : > { %595 = vperm.xlu0 %1474, %v1718_v24  }
  0x40   : > { %1477 = vset.pattern.permute.xlu0 %v1585_v27 }
  0x41   : > { %1048 = vperm.xlu0 %1477, %v1684_v0  }
  0x45   : > { %498 = vrot.lane.b32.xlu0 %v495_v28, %s1582_s17 }
  0x46   : > { %1480 = vset.pattern.permute.xlu0 %v1579_v8  ;;  %v1390_v8 = vld [vmem:[%s2258_s2 + $0x1] ss:$8 sm:$0x3] }
  0x47   : > { %v884_v9 = vrot.slane %v1390_v8, %v1702_v13 }
  0x49   : > { %637 = vrot.lane.b32.xlu0 %v634_v29, %s1583_s24 }
  0x9d   : > { %v1823_v18 = vpop.permute.xlu1 %802 }
  0xa1   : > { %v198_v31 = vpop.permute.xlu0 %197 }
  0xa2   : > { %v199_v32 = vrot.slane %v198_v31, 7  ;;  %v1831_v21 = vpop.permute.xlu1 %917 }
  0xa4   : > { %v201_v33 = vsel %vm200_vm3, %v199_v32, %v198_v31 }
  0xa5   : > { %206 = vst.msk [vmem:[#allocation2] sm:$0x7] %vm205_vm4, %v201_v33  ;;  %v209_v34 = vpop.permute.xlu0 %208 }
  0xa6   : > { %v210_v35 = vrot.slane %v209_v34, 7 }
  0xa7   : > { %v1836_v23 = vpop.permute.xlu1 %1179 }
  0xa8   : > { %v211_v36 = vsel %vm200_vm3, %v210_v35, %v209_v34  ;;  %vm547_vm3 = vcmask 30720  }
  0xa9   : > { %214 = vst.msk [vmem:[#allocation2 + $0x3] sm:$0x7] %vm205_vm4, %v211_v36  ;;  %vm686_vm4 = vcmask 47104  }
  0xac   : > { %v215_v38 = vld [vmem:[#allocation2] sm:$0x7] }
  0xad   : > { %v242_v39 = vld [vmem:[#allocation2] sm:$0x7]  ;;  %218 = vst.msk [vmem:[#allocation3] ss:$8 sm:$0x7] %vm1736_vm5, %v215_v38 }
  0xae   : > { %v220_v40 = vld [vmem:[#allocation2] sm:$0x7]  ;;  %244 = vrot.lane.b32.xlu0 %v242_v39, %s1587_s26 }
  0xaf   : > { %222 = vrot.lane.b32.xlu1 %v220_v40, %s1588_s27  ;;  %v264_v42 = vld [vmem:[#allocation2] sm:$0x7] }
  0xb0   : > { %v733_v41 = vld [vmem:[#allocation2 + $0x3] sm:$0x7]  ;;  %v231_v43 = vld [vmem:[#allocation2] sm:$0x7] }
  0xb1   : > { %735 = vst.msk [vmem:[#allocation3 + $0x18] ss:$8 sm:$0x7] %vm1736_vm5, %v733_v41  ;;  %v757_v44 = vld [vmem:[#allocation2 + $0x3] sm:$0x7] }
  0xb2   : > { %266 = vrot.lane.b32.xlu0 %v264_v42, %s1589_s5  ;;  %v253_v45 = vld [vmem:[#allocation2] sm:$0x7]  ;;  %v777_v46 = vld [vmem:[#allocation2 + $0x3] sm:$0x7] }
  0xb3   : > { %233 = vrot.lane.b32.xlu1 %v231_v43, %s1590_s6  ;;  %v275_v48 = vld [vmem:[#allocation2] sm:$0x7]  ;;  %v737_v51 = vld [vmem:[#allocation2 + $0x3] sm:$0x7] }
  0xb4   : > { %v747_v54 = vld [vmem:[#allocation2 + $0x3] sm:$0x7] }
  0xb5   : > { %v767_v56 = vld [vmem:[#allocation2 + $0x3] sm:$0x7] }
  0xb6   : > { %759 = vrot.lane.b32.xlu0 %v757_v44, %s1587_s26  ;;  %v787_v57 = vld [vmem:[#allocation2 + $0x3] sm:$0x7]  ;;  %s168_s26 = sand.u32 1, %s1565_s21  }
  0xb7   : > { %255 = vrot.lane.b32.xlu1 %v253_v45, %s1591_s7 }
  0xba   : > { %779 = vrot.lane.b32.xlu0 %v777_v46, %s1589_s5  ;;  %s1405_s5 = sshll.u32 %s1653_s23, 7  ;;  %s1603_s23 = smov [#allocation6]  }
  0xbb   : > { %277 = vrot.lane.b32.xlu1 %v275_v48, %s1592_s10 }
  0xbe   : > { %956 = vrot.lane.b32.xlu0 %v953_v49, %s1593_s14 }
  0xbf   : > { %739 = vrot.lane.b32.xlu1 %v737_v51, %s1588_s27  ;;  %s1378_s27 = sshll.u32 %s168_s26, 3 }
  0xc2   : > { %1087 = vrot.lane.b32.xlu0 %v1084_v52, %s1594_s18 }
  0xc3   : > { %749 = vrot.lane.b32.xlu1 %v747_v54, %s1590_s6  ;;  %s1600_s6 = smov 125  }
  0xc6   : > { %1218 = vrot.lane.b32.xlu0 %v1215_v55, %s1595_s19 }
  0xc7   : > { %769 = vrot.lane.b32.xlu1 %v767_v56, %s1591_s7  ;;  %s1596_s7 = smov 1  }
  0xca   : > { %387 = vperm.xlu0 %1480, %v1718_v24  }
  0xcb   : > { %789 = vrot.lane.b32.xlu1 %v787_v57, %s1592_s10  ;;  %s1602_s10 = smov 122  }
  0xce   : > { %1483 = vset.pattern.permute.xlu0 %v1586_v30 }
  0xcf   : > { %954 = vrot.lane.b32.xlu1 %v949_v58, %s1593_s14  ;;  %852 = vperm.xlu0 %1483, %v1684_v0  }
  0xd3   : > { %1085 = vrot.lane.b32.xlu1 %v1080_v60, %s1594_s18  ;;  %371 = vrot.lane.b32.xlu0 %v366_v61, %s1596_s7 }
  0xd4   : > { %1487 = vset.pattern.permute.xlu0 %v1580_v19 }
  0xd7   : > { %1216 = vrot.lane.b32.xlu1 %v1211_v63, %s1595_s19  ;;  %427 = vrot.lane.b32.xlu0 %v422_v1, %s1593_s14 }
  0xdb   : > { %331 = vperm.xlu1 %1479, %v1718_v24   ;;  %568 = vrot.lane.b32.xlu0 %v565_v5, %s1594_s18 }
  0xdf   : > { %1481 = vset.pattern.permute.xlu1 %v1585_v27  ;;  %705 = vrot.lane.b32.xlu0 %v700_v7, %s1595_s19 }
  0xe0   : > { %526 = vperm.xlu1 %1481, %v1718_v24  }
  0xe3   : > { %889 = vrot.lane.b32.xlu0 %v884_v9, %s1596_s7 }
  0xe4   : > { %1482 = vset.pattern.permute.xlu1 %v1580_v19  ;;  %v1825_v19 = vpop.permute.xlu0 %456 }
  0xe5   : > { %665 = vperm.xlu1 %1482, %v1718_v24  }
  0xe7   : > { %1022 = vrot.lane.b32.xlu0 %v1019_v11, %s1582_s17 }
  0xe8   : > { %v1833_v22 = vpop.permute.xlu0 %595 }
  0xe9   : > { %1484 = vset.pattern.permute.xlu1 %v1576_v2  ;;  %v561_v2 = vrot.slane %v1387_v4, %v1702_v13 }
  0xea   : > { %983 = vperm.xlu1 %1484, %v1684_v0  }
  0xeb   : > { %1151 = vrot.lane.b32.xlu0 %v1146_v14, %s1583_s24 }
  0xec   : > { %v1838_v24 = vpop.permute.xlu0 %1048 }
  0xee   : > { %1485 = vset.pattern.permute.xlu1 %v1584_v25  ;;  %v1840_v25 = vpop.permute.xlu1 %496 }
  0xef   : > { %1114 = vperm.xlu1 %1485, %v1684_v0   ;;  %v888_v0 = vrot.slane %v1390_v8, %v1724_v26 }
  0xf0   : > { %v1842_v27 = vpop.permute.xlu0 %498 }
  0xf2   : > { %v1844_v28 = vpop.permute.xlu1 %635 }
  0xf3   : > { %373 = vrot.lane.b32.xlu1 %v370_v15, %s1596_s7 }
  0xf4   : > { %1486 = vset.pattern.permute.xlu1 %v1577_v3  ;;  %v1015_v3 = vrot.slane %v1392_v10, %v1702_v13  ;;  %v1846_v29 = vpop.permute.xlu0 %637 }
  0xf7   : > { %429 = vrot.lane.b32.xlu1 %v426_v16, %s1593_s14 }
  0xfb   : > { %566 = vrot.lane.b32.xlu1 %v561_v2, %s1594_s18 }
  0xff   : > { %707 = vrot.lane.b32.xlu1 %v704_v17, %s1595_s19  ;;  %s1599_s19 = smov 127  }
 0x103   : > { %891 = vrot.lane.b32.xlu1 %v888_v0, %s1596_s7 }
 0x107   : > { %1020 = vrot.lane.b32.xlu1 %v1015_v3, %s1582_s17  ;;  %s1597_s17 = smov 126  }
 0x10b   : > { %1153 = vrot.lane.b32.xlu1 %v1150_v20, %s1583_s24  ;;  %s1598_s24 = smov 124  }
 0x120   : > { %v245_v31 = vpop.permute.xlu0 %244 }
 0x121   : > { %v223_v30 = vpop.permute.xlu1 %222  ;;  %v246_v33 = vrot.slane %v245_v31, 1 }
 0x122   : > { %v224_v32 = vrot.slane %v223_v30, 1 }
 0x123   : > { %v248_v35 = vsel %vm247_vm7, %v245_v31, %v246_v33 }
 0x124   : > { %v226_v34 = vsel %vm225_vm6, %v223_v30, %v224_v32  ;;  %251 = vst.msk [vmem:[#allocation3 + $0x3] ss:$8 sm:$0x7] %vm1736_vm5, %v248_v35  ;;  %v267_v38 = vpop.permute.xlu0 %266 }
 0x125   : > { %229 = vst.msk [vmem:[#allocation3 + $0x1] ss:$8 sm:$0x7] %vm1736_vm5, %v226_v34  ;;  %v234_v36 = vpop.permute.xlu1 %233  ;;  %v268_v40 = vrot.slane %v267_v38, 1 }
 0x126   : > { %v235_v39 = vrot.slane %v234_v36, 1 }
 0x127   : > { %v270_v42 = vsel %vm269_vm9, %v267_v38, %v268_v40 }
 0x128   : > { %v237_v41 = vsel %vm236_vm8, %v234_v36, %v235_v39  ;;  %273 = vst.msk [vmem:[#allocation3 + $0x5] ss:$8 sm:$0x7] %vm1736_vm5, %v270_v42  ;;  %v760_v44 = vpop.permute.xlu0 %759 }
 0x129   : > { %240 = vst.msk [vmem:[#allocation3 + $0x2] ss:$8 sm:$0x7] %vm1736_vm5, %v237_v41  ;;  %v256_v43 = vpop.permute.xlu1 %255  ;;  %v761_v46 = vrot.slane %v760_v44, 1 }
 0x12a   : > { %v257_v45 = vrot.slane %v256_v43, 1 }
 0x12b   : > { %v762_v48 = vsel %vm247_vm7, %v760_v44, %v761_v46  ;;  %vm337_vm7 = vcmask 1046536  }
 0x12c   : > { %v259_v47 = vsel %vm258_vm10, %v256_v43, %v257_v45  ;;  %765 = vst.msk [vmem:[#allocation3 + $0x1b] ss:$8 sm:$0x7] %vm1736_vm5, %v762_v48  ;;  %v780_v50 = vpop.permute.xlu0 %779 }
 0x12d   : > { %262 = vst.msk [vmem:[#allocation3 + $0x4] ss:$8 sm:$0x7] %vm1736_vm5, %v259_v47  ;;  %v278_v49 = vpop.permute.xlu1 %277  ;;  %v781_v52 = vrot.slane %v780_v50, 1 }
 0x12e   : > { %v279_v51 = vrot.slane %v278_v49, 1 }
 0x12f   : > { %v782_v54 = vsel %vm269_vm9, %v780_v50, %v781_v52  ;;  %vm352_vm9 = vcmask 6144  }
 0x130   : > { %v281_v53 = vsel %vm280_vm11, %v278_v49, %v279_v51  ;;  %785 = vst.msk [vmem:[#allocation3 + $0x1d] ss:$8 sm:$0x7] %vm1736_vm5, %v782_v54  ;;  %v1908_v37 = vpop.permute.xlu0 %956 }
 0x131   : > { %284 = vst.msk [vmem:[#allocation3 + $0x6] ss:$8 sm:$0x7] %vm1736_vm5, %v281_v53  ;;  %v740_v55 = vpop.permute.xlu1 %739 }
 0x132   : > { %v741_v56 = vrot.slane %v740_v55, 1 }
 0x134   : > { %v742_v57 = vsel %vm225_vm6, %v740_v55, %v741_v56  ;;  %vm639_vm6 = vcmask 39936  }
 0x135   : > { %745 = vst.msk [vmem:[#allocation3 + $0x19] ss:$8 sm:$0x7] %vm1736_vm5, %v742_v57  ;;  %v750_v58 = vpop.permute.xlu1 %749 }
 0x136   : > { %v751_v59 = vrot.slane %v750_v58, 1 }
 0x138   : > { %v752_v60 = vsel %vm236_vm8, %v750_v58, %v751_v59  ;;  %v1876_v61 = vld [vmem:[#allocation3 + $0x8] sm:$0x7f]  ;;  %v1878_v62 = vld [vmem:[#allocation3] sm:$0x7f]  ;;  %v1880_v63 = vld [vmem:[#allocation3 + $0x10] sm:$0x7f] }
 0x139   : > { %755 = vst.msk [vmem:[#allocation3 + $0x1a] ss:$8 sm:$0x7] %vm1736_vm5, %v752_v60  ;;  %v770_v1 = vpop.permute.xlu1 %769  ;;  %v460_v4 = vmul.f32 %v1825_v19, %v1876_v61  ;;  %v459_v5 = vmul.f32 %v1825_v19, %v1878_v62  ;;  %v598_v6 = vmul.f32 %v1833_v22, %v1878_v62  ;;  %v461_v7 = vmul.f32 %v1825_v19, %v1880_v63  ;;  %v1918_v60 = vpop.permute.xlu0 %1087 }
 0x13a   : > { %v771_v8 = vrot.slane %v770_v1, 1  ;;  %v600_v32 = vmul.f32 %v1833_v22, %v1880_v63  ;;  %v599_v39 = vmul.f32 %v1833_v22, %v1876_v61  ;;  %v501_v22 = vsel %vm500_vm1, %v1840_v25, %v1842_v27 }
 0x13b   : > { %v470_v9 = vsel %vm296_vm12, %v460_v4, 0.0  ;;  %v463_v10 = vsel %vm462_vm13, %v459_v5, 0.0  ;;  %v602_v11 = vsel %vm601_vm14, %v598_v6, 0.0  ;;  %v478_v12 = vsel %vm477_vm15, %v461_v7, 0.0 }
 0x13c   : > { %v772_v14 = vsel %vm258_vm10, %v770_v1, %v771_v8  ;;  %v471_v15 = vrot.slane %v470_v9, 4  ;;  %v464_v16 = vrot.slane %v463_v10, 4  ;;  %v603_v2 = vrot.slane %v602_v11, 4 }
 0x13d   : > { %775 = vst.msk [vmem:[#allocation3 + $0x1c] ss:$8 sm:$0x7] %vm1736_vm5, %v772_v14  ;;  %v790_v17 = vpop.permute.xlu1 %789  ;;  %v479_v0 = vrot.slane %v478_v12, 4  ;;  %v617_v47 = vsel %vm616_vm0, %v600_v32, 0.0  ;;  %v609_v49 = vsel %vm296_vm12, %v599_v39, 0.0 }
 0x13e   : > { %v791_v19 = vrot.slane %v790_v17, 1  ;;  %v472_v3 = vadd.f32 %v471_v15, %v470_v9  ;;  %v465_v20 = vadd.f32 %v464_v16, %v463_v10  ;;  %v604_v30 = vadd.f32 %v603_v2, %v602_v11  ;;  %v1932_v11 = vpop.permute.xlu0 %1218 }
 0x13f   : > { %v480_v31 = vadd.f32 %v479_v0, %v478_v12  ;;  %v618_v52 = vrot.slane %v617_v47, 4  ;;  %v610_v56 = vrot.slane %v609_v49, 4  ;;  %vm532_vm8 = vcmask 1046560  }
 0x140   : > { %v792_v33 = vsel %vm280_vm11, %v790_v17, %v791_v19  ;;  %v473_v34 = vrot.slane %v472_v3, 2  ;;  %v466_v35 = vrot.slane %v465_v20, 2  ;;  %v605_v36 = vrot.slane %v604_v30, 2 }
 0x141   : > { %795 = vst.msk [vmem:[#allocation3 + $0x1e] ss:$8 sm:$0x7] %vm1736_vm5, %v792_v33  ;;  %v481_v38 = vrot.slane %v480_v31, 2  ;;  %v1916_v58 = vpop.permute.xlu1 %954  ;;  %v619_v59 = vadd.f32 %v618_v52, %v617_v47  ;;  %v611_v4 = vadd.f32 %v610_v56, %v609_v49  ;;  %vm393_vm5 = vcmask 1046544  }
 0x142   : > { %v474_v40 = vadd.f32 %v473_v34, %v472_v3  ;;  %v467_v41 = vadd.f32 %v466_v35, %v465_v20  ;;  %v606_v42 = vadd.f32 %v605_v36, %v604_v30  ;;  %vm431_vm10 = vcmask 15360  }
 0x143   : > { %v482_v43 = vadd.f32 %v481_v38, %v480_v31  ;;  %v620_v6 = vrot.slane %v619_v59, 2  ;;  %v612_v8 = vrot.slane %v611_v4, 2  ;;  %vm570_vm11 = vcmask 31744  }
 0x144   : > { %v475_v44 = vrot.slane %v474_v40, 1  ;;  %v468_v45 = vrot.slane %v467_v41, 1  ;;  %v607_v46 = vrot.slane %v606_v42, 1 }
 0x145   : > { %v483_v48 = vrot.slane %v482_v43, 1  ;;  %v1926_v7 = vpop.permute.xlu1 %1085  ;;  %v621_v14 = vadd.f32 %v620_v6, %v619_v59  ;;  %v613_v16 = vadd.f32 %v612_v8, %v611_v4  ;;  %v1971_v59 = vld [vmem:[%s2258_s2] ss:$8 sm:$0x3] }
 0x146   : > { %v476_v50 = vadd.f32 %v475_v44, %v474_v40  ;;  %v469_v51 = vadd.f32 %v468_v45, %v467_v41  ;;  %v608_v55 = vadd.f32 %v607_v46, %v606_v42  ;;  %v640_v42 = vsel %vm639_vm6, %v1844_v28, %v1846_v29 }
 0x147   : > { %v484_v57 = vadd.f32 %v483_v48, %v482_v43  ;;  %v622_v20 = vrot.slane %v621_v14, 1  ;;  %v614_v32 = vrot.slane %v613_v16, 1 }
 0x148   : > { %v506_v53 = vmul.f32 %v501_v22, %v476_v50  ;;  %v505_v54 = vmul.f32 %v1840_v25, %v469_v51  ;;  %v644_v1 = vmul.f32 %v1844_v28, %v608_v55  ;;  %v1923_v25 = vld [vmem:[#allocation3 + $0x28] sm:$0x7f]  ;;  %v1928_v9 = vld [vmem:[#allocation3 + $0x18] sm:$0x7f]  ;;  %v1941_v17 = vld [vmem:[#allocation3 + $0x20] sm:$0x7f] }
 0x149   : > { %v507_v5 = vmul.f32 %v1842_v27, %v484_v57  ;;  %v922_v10 = vmul.f32 %v1831_v21, %v1923_v25  ;;  %v1053_v27 = vmul.f32 %v1838_v24, %v1923_v25  ;;  %v1184_v12 = vmul.f32 %v1836_v23, %v1923_v25  ;;  %v1943_v0 = vpop.permute.xlu1 %1216  ;;  %v388_v31 = vpop.permute.xlu0 %387 }
 0x14a   : > { %513 = vrot.lane.b32.xlu1 %v506_v53, %s1597_s17  ;;  %511 = vrot.lane.b32.xlu0 %v505_v54, %s1597_s17  ;;  %v920_v15 = vmul.f32 %v1831_v21, %v1928_v9  ;;  %v921_v34 = vmul.f32 %v1831_v21, %v1941_v17  ;;  %v390_v39 = vmul.f32 %v388_v31, %v1878_v62 }
 0x14b   : > { %v937_v2 = vsel %vm408_vm2, %v922_v10, 0.0  ;;  %v1068_v19 = vsel %vm547_vm3, %v1053_v27, 0.0  ;;  %v1199_v3 = vsel %vm686_vm4, %v1184_v12, 0.0  ;;  %v391_v40 = vmul.f32 %v388_v31, %v1876_v61 }
 0x14c   : > { %v923_v30 = vsel %vm393_vm5, %v920_v15, 0.0  ;;  %v938_v33 = vrot.slane %v937_v2, 4  ;;  %v1069_v35 = vrot.slane %v1068_v19, 4  ;;  %v1200_v36 = vrot.slane %v1199_v3, 4 }
 0x14d   : > { %v924_v38 = vrot.slane %v923_v30, 4  ;;  %v623_v41 = vadd.f32 %v622_v20, %v621_v14  ;;  %v615_v43 = vadd.f32 %v614_v32, %v613_v16  ;;  %v392_v46 = vmul.f32 %v388_v31, %v1880_v63 }
 0x14e   : > { %650 = vrot.lane.b32.xlu1 %v644_v1, %s1598_s24  ;;  %515 = vrot.lane.b32.xlu0 %v507_v5, %s1597_s17  ;;  %v939_v45 = vadd.f32 %v938_v33, %v937_v2  ;;  %v930_v21 = vsel %vm296_vm12, %v921_v34, 0.0  ;;  %v1070_v48 = vadd.f32 %v1069_v35, %v1068_v19  ;;  %v1201_v49 = vadd.f32 %v1200_v36, %v1199_v3  ;;  %v798_v3 = vld [vmem:[#allocation3 + $0x20] sm:$0x7f]  ;;  %v797_v35 = vld [vmem:[#allocation3 + $0x18] sm:$0x7f] }
 0x14f   : > { %v646_v47 = vmul.f32 %v1846_v29, %v623_v41  ;;  %v645_v50 = vmul.f32 %v640_v42, %v615_v43  ;;  %v394_v51 = vsel %vm393_vm5, %v390_v39, 0.0  ;;  %v401_v22 = vsel %vm296_vm12, %v391_v40, 0.0 }
 0x150   : > { %v925_v28 = vadd.f32 %v924_v38, %v923_v30  ;;  %v1051_v52 = vmul.f32 %v1838_v24, %v1928_v9  ;;  %v931_v53 = vrot.slane %v930_v21, 4  ;;  %v940_v56 = vrot.slane %v939_v45, 2 }
 0x151   : > { %v409_v57 = vsel %vm408_vm2, %v392_v46, 0.0  ;;  %v1071_v1 = vrot.slane %v1070_v48, 2  ;;  %v1202_v4 = vrot.slane %v1201_v49, 2  ;;  %v395_v10 = vrot.slane %v394_v51, 4  ;;  %v853_v46 = vpop.permute.xlu0 %852 }
 0x152   : > { %654 = vrot.lane.b32.xlu1 %v646_v47, %s1598_s24  ;;  %652 = vrot.lane.b32.xlu0 %v645_v50, %s1598_s24  ;;  %v402_v27 = vrot.slane %v401_v22, 4  ;;  %v1054_v12 = vsel %vm532_vm8, %v1051_v52, 0.0  ;;  %v410_v14 = vrot.slane %v409_v57, 4  ;;  %v926_v15 = vrot.slane %v925_v28, 2 }
 0x153   : > { %v932_v16 = vadd.f32 %v931_v53, %v930_v21  ;;  %vm671_vm2 = vcmask 1046576   ;;  %v941_v2 = vadd.f32 %v940_v56, %v939_v45  ;;  %v1052_v19 = vmul.f32 %v1838_v24, %v1941_v17 }
 0x154   : > { %v1072_v31 = vadd.f32 %v1071_v1, %v1070_v48  ;;  %v1203_v32 = vadd.f32 %v1202_v4, %v1201_v49  ;;  %v1991_v33 = vsel %vm431_vm10, %v1916_v58, %v1908_v37  ;;  %v1055_v34 = vrot.slane %v1054_v12, 4 }
 0x155   : > { %v1993_v36 = vadd.f32 %v395_v10, %v394_v51  ;;  %v1995_v38 = vadd.f32 %v402_v27, %v401_v22  ;;  %v2000_v24 = vsel %vm570_vm11, %v1926_v7, %v1918_v60  ;;  %v1183_v39 = vmul.f32 %v1836_v23, %v1941_v17 }
 0x156   : > { %v2004_v40 = vadd.f32 %v410_v14, %v409_v57  ;;  %v927_v41 = vadd.f32 %v926_v15, %v925_v28  ;;  %v933_v42 = vrot.slane %v932_v16, 2  ;;  %v806_v43 = vmul.f32 %v1823_v18, %v798_v3 }
 0x157   : > { %v942_v45 = vrot.slane %v941_v2, 1  ;;  %v1061_v21 = vsel %vm296_vm12, %v1052_v19, 0.0  ;;  %v1182_v47 = vmul.f32 %v1836_v23, %v1928_v9  ;;  %v805_v48 = vmul.f32 %v1823_v18, %v797_v35 }
 0x158   : > { %v1073_v49 = vrot.slane %v1072_v31, 1  ;;  %v1204_v50 = vrot.slane %v1203_v32, 1  ;;  %v1056_v51 = vadd.f32 %v1055_v34, %v1054_v12  ;;  %v814_v22 = vsel %vm296_vm12, %v806_v43, 0.0 }
 0x159   : > { %v1192_v28 = vsel %vm296_vm12, %v1183_v39, 0.0  ;;  %v815_v53 = vrot.slane %v814_v22, 4  ;;  %v855_v56 = vmul.f32 %v853_v46, %v1928_v9  ;;  %v1062_v57 = vrot.slane %v1061_v21, 4 }
 0x15a   : > { %v332_v44 = vpop.permute.xlu1 %331  ;;  %v928_v1 = vrot.slane %v927_v41, 1  ;;  %v934_v18 = vadd.f32 %v933_v42, %v932_v16  ;;  %v1185_v4 = vsel %vm671_vm2, %v1182_v47, 0.0  ;;  %v856_v27 = vmul.f32 %v853_v46, %v1941_v17 }
 0x15b   : > { %v334_v54 = vmul.f32 %v332_v44, %v1878_v62  ;;  %v335_v29 = vmul.f32 %v332_v44, %v1876_v61  ;;  %v336_v55 = vmul.f32 %v332_v44, %v1880_v63  ;;  %v816_v10 = vadd.f32 %v815_v53, %v814_v22 }
 0x15c   : > { %v1193_v12 = vrot.slane %v1192_v28, 4  ;;  %v943_v19 = vadd.f32 %v942_v45, %v941_v2  ;;  %v1074_v3 = vadd.f32 %v1073_v49, %v1072_v31  ;;  %v1057_v34 = vrot.slane %v1056_v51, 2 }
 0x15d   : > { %v1974_v5 = vsel %vm337_vm7, %v334_v54, 0.0  ;;  %v1977_v6 = vsel %vm352_vm9, %v336_v55, 0.0  ;;  %v345_v52 = vsel %vm296_vm12, %v335_v29, 0.0  ;;  %v807_v54 = vsel %vm296_vm12, %v805_v48, 0.0 }
 0x15e   : > { %v808_v23 = vrot.slane %v807_v54, 4  ;;  %v346_v14 = vrot.slane %v345_v52, 4  ;;  %v817_v35 = vrot.slane %v816_v10, 2  ;;  %v1205_v39 = vadd.f32 %v1204_v50, %v1203_v32 }
 0x15f   : > { %v1979_v8 = vpop.permute.xlu1 %526  ;;  %v1063_v43 = vadd.f32 %v1062_v57, %v1061_v21  ;;  %v1186_v48 = vrot.slane %v1185_v4, 4  ;;  %v929_v30 = vadd.f32 %v928_v1, %v927_v41  ;;  %v935_v16 = vrot.slane %v934_v18, 1 }
 0x160   : > { %v809_v15 = vadd.f32 %v808_v23, %v807_v54  ;;  %v857_v42 = vmul.f32 %v853_v46, %v1923_v25  ;;  %v818_v47 = vadd.f32 %v817_v35, %v816_v10  ;;  %v858_v22 = vsel %vm337_vm7, %v855_v56, 0.0 }
 0x161   : > { %v1194_v53 = vadd.f32 %v1193_v12, %v1192_v28  ;;  %v347_v20 = vadd.f32 %v346_v14, %v345_v52  ;;  %vm375_vm5 = vcmask 7168   ;;  %v2026_v2 = vmul.f32 %v1908_v37, %v943_v19 }
 0x162   : > { %v810_v55 = vrot.slane %v809_v15, 2  ;;  %v2029_v31 = vsel %vm296_vm12, %v856_v27, 0.0  ;;  %v1058_v32 = vadd.f32 %v1057_v34, %v1056_v51  ;;  %v819_v45 = vrot.slane %v818_v47, 1 }
 0x163   : > { %v1064_v21 = vrot.slane %v1063_v43, 2  ;;  %v1187_v41 = vadd.f32 %v1186_v48, %v1185_v4  ;;  %v529_v46 = vmul.f32 %v1979_v8, %v1878_v62  ;;  %v2036_v28 = vmul.f32 %v1918_v60, %v1074_v3 }
 0x164   : > { %v2007_v44 = vpop.permute.xlu1 %665  ;;  %v811_v54 = vadd.f32 %v810_v55, %v809_v15  ;;  %v2039_v52 = vmul.f32 %v1932_v11, %v1205_v39  ;;  %v354_v37 = vrot.slane %v1977_v6, 4  ;;  %v820_v55 = vadd.f32 %v819_v45, %v818_v47 }
 0x165   : > { %v936_v56 = vadd.f32 %v935_v16, %v934_v18  ;;  %vm709_vm7 = vcmask 48128   ;;  %v1195_v51 = vrot.slane %v1194_v53, 2  ;;  %v348_v57 = vrot.slane %v347_v20, 2 }
 0x166   : > { %v812_v49 = vrot.slane %v811_v54, 1  ;;  %v859_v1 = vrot.slane %v858_v22, 4  ;;  %v1059_v4 = vrot.slane %v1058_v32, 1  ;;  %v2265_v10 = vrot.slane %v1971_v59, %v1724_v26 }
 0x167   : > { %v531_v60 = vmul.f32 %v1979_v8, %v1880_v63  ;;  %v1065_v12 = vadd.f32 %v1064_v21, %v1063_v43  ;;  %v1188_v14 = vrot.slane %v1187_v41, 2  ;;  %v2266_v15 = vrot.slane %v1971_v59, %v1702_v13  ;;  %v2067_v21 = vpop.permute.xlu0 %371 }
 0x168   : > { %v813_v23 = vadd.f32 %v812_v49, %v811_v54  ;;  %v834_v27 = vmul.f32 %v2265_v10, %v820_v55  ;;  %v533_v18 = vsel %vm532_vm8, %v529_v46, 0.0  ;;  %v962_v3 = vmul.f32 %v1916_v58, %v929_v30 }
 0x169   : > { %v2021_v29 = vpop.permute.xlu1 %983  ;;  %v866_v34 = vrot.slane %v2029_v31, 4  ;;  %v355_v35 = vadd.f32 %v354_v37, %v1977_v6  ;;  %v530_v39 = vmul.f32 %v1979_v8, %v1876_v61  ;;  %v963_v43 = vmul.f32 %v1991_v33, %v936_v56 }
 0x16a   : > { %v833_v19 = vmul.f32 %v2266_v15, %v813_v23  ;;  %839 = vrot.lane.b32.xlu1 %v834_v27, %s1596_s7  ;;  %v2059_v48 = vsel %vm352_vm9, %v857_v42, 0.0  ;;  %v1196_v59 = vadd.f32 %v1195_v51, %v1194_v53  ;;  %v349_v47 = vadd.f32 %v348_v57, %v347_v20 }
 0x16b   : > { %v1060_v58 = vadd.f32 %v1059_v4, %v1058_v32  ;;  %v534_v30 = vrot.slane %v533_v18, 4  ;;  %v548_v54 = vsel %vm547_vm3, %v531_v60, 0.0  ;;  %v668_v6 = vmul.f32 %v2007_v44, %v1878_v62 }
 0x16c   : > { %837 = vrot.lane.b32.xlu0 %v833_v19, %s1596_s7  ;;  %v2065_v45 = vadd.f32 %v859_v1, %v858_v22  ;;  %v1066_v8 = vrot.slane %v1065_v12, 1  ;;  %v1189_v33 = vadd.f32 %v1188_v14, %v1187_v41  ;;  %v350_v42 = vrot.slane %v349_v47, 1  ;;  %s1601_s7 = smov 123  }
 0x16d   : > { %v397_v53 = vrot.slane %v1993_v36, 2  ;;  %v540_v20 = vsel %vm296_vm12, %v530_v39, 0.0  ;;  %v356_v32 = vrot.slane %v355_v35, 2  ;;  %v1197_v46 = vrot.slane %v1196_v59, 1 }
 0x16e   : > { %v2033_v50 = vpop.permute.xlu1 %1114  ;;  %970 = vrot.lane.b32.xlu1 %v963_v43, %s1599_s19  ;;  %v549_v62 = vrot.slane %v548_v54, 4  ;;  %v669_v22 = vmul.f32 %v2007_v44, %v1876_v61  ;;  %v351_v41 = vadd.f32 %v350_v42, %v349_v47  ;;  %v1093_v37 = vmul.f32 %v1926_v7, %v1060_v58 }
 0x16f   : > { %v535_v55 = vadd.f32 %v534_v30, %v533_v18  ;;  %v672_v56 = vsel %vm671_vm2, %v668_v6, 0.0  ;;  %v357_v51 = vadd.f32 %v356_v32, %v355_v35  ;;  %v1067_v57 = vadd.f32 %v1066_v8, %v1065_v12 }
 0x170   : > { %968 = vrot.lane.b32.xlu0 %v962_v3, %s1599_s19  ;;  %v1190_v23 = vrot.slane %v1189_v33, 1  ;;  %v541_v1 = vrot.slane %v540_v20, 4  ;;  %v1220_v10 = vsel %vm709_vm7, %v1943_v0, %v1932_v11  ;;  %v398_v27 = vadd.f32 %v397_v53, %v1993_v36 }
 0x171   : > { %v339_v61 = vrot.slane %v1974_v5, 4  ;;  %v358_v7 = vrot.slane %v357_v51, 1  ;;  %v1198_v60 = vadd.f32 %v1197_v46, %v1196_v59  ;;  %v550_v14 = vadd.f32 %v549_v62, %v548_v54 }
 0x172   : > { %v374_v16 = vpop.permute.xlu1 %373  ;;  %1099 = vrot.lane.b32.xlu1 %v1093_v37, %s1600_s6  ;;  %v673_v12 = vrot.slane %v672_v56, 4  ;;  %v679_v15 = vsel %vm296_vm12, %v669_v22, 0.0  ;;  %v670_v19 = vmul.f32 %v2007_v44, %v1880_v63  ;;  %v2267_v36 = vrot.slane %v1995_v38, 2 }
 0x173   : > { %v376_v49 = vsel %vm375_vm5, %v2067_v21, %v374_v16  ;;  %v359_v11 = vadd.f32 %v358_v7, %v357_v51  ;;  %v536_v3 = vrot.slane %v535_v55, 2  ;;  %v1094_v35 = vmul.f32 %v2000_v24, %v1067_v57 }
 0x174   : > { %v2079_v4 = vmul.f32 %v376_v49, %v351_v41  ;;  %972 = vrot.lane.b32.xlu0 %v2026_v2, %s1599_s19  ;;  %v405_v18 = vadd.f32 %v2267_v36, %v1995_v38  ;;  %v1191_v39 = vadd.f32 %v1190_v23, %v1189_v33  ;;  %v542_v43 = vadd.f32 %v541_v1, %v540_v20  ;;  %v428_v49 = vpop.permute.xlu0 %427 }
 0x175   : > { %v412_v59 = vrot.slane %v2004_v40, 2  ;;  %v873_v2 = vrot.slane %v2059_v48, 4  ;;  %v340_v47 = vadd.f32 %v339_v61, %v1974_v5  ;;  %v680_v58 = vrot.slane %v679_v15, 4 }
 0x176   : > { %1103 = vrot.lane.b32.xlu1 %v2036_v28, %s1600_s6  ;;  %v2101_v63 = vmul.f32 %v374_v16, %v359_v11  ;;  %v1225_v44 = vmul.f32 %v1220_v10, %v1198_v60  ;;  %v399_v30 = vrot.slane %v398_v27, 1  ;;  %v551_v38 = vrot.slane %v550_v14, 2  ;;  %v430_v8 = vpop.permute.xlu1 %429 }
 0x177   : > { %v674_v54 = vadd.f32 %v673_v12, %v672_v56  ;;  %v687_v24 = vsel %vm686_vm4, %v670_v19, 0.0  ;;  %v986_v6 = vmul.f32 %v2021_v29, %v1928_v9  ;;  %v406_v33 = vrot.slane %v405_v18, 1 }
 0x178   : > { %1101 = vrot.lane.b32.xlu0 %v1094_v35, %s1600_s6  ;;  %v537_v5 = vadd.f32 %v536_v3, %v535_v55  ;;  %v1224_v42 = vmul.f32 %v1943_v0, %v1191_v39  ;;  %v543_v53 = vrot.slane %v542_v43, 2  ;;  %v987_v28 = vmul.f32 %v2021_v29, %v1941_v17  ;;  %v569_v36 = vpop.permute.xlu0 %568 }
 0x179   : > { %v413_v16 = vadd.f32 %v412_v59, %v2004_v40  ;;  %v2114_v20 = vadd.f32 %v866_v34, %v2029_v31  ;;  %v2117_v32 = vadd.f32 %v873_v2, %v2059_v48  ;;  %v341_v46 = vrot.slane %v340_v47, 2 }
 0x17a   : > { %v681_v62 = vadd.f32 %v680_v58, %v679_v15  ;;  %1232 = vrot.lane.b32.xlu1 %v1225_v44, %s1601_s7  ;;  %v400_v0 = vadd.f32 %v399_v30, %v398_v27  ;;  %v675_v22 = vrot.slane %v674_v54, 2  ;;  %v688_v41 = vrot.slane %v687_v24, 4  ;;  %v1496_v27 = vld [vmem:[%s2257_s1] sm:$0x7f] }
 0x17b   : > { %v432_v40 = vsel %vm431_vm10, %v428_v49, %v430_v8  ;;  %v989_v37 = vsel %vm462_vm13, %v986_v6, 0.0  ;;  %v407_v31 = vadd.f32 %v406_v33, %v405_v18  ;;  %v538_v34 = vrot.slane %v537_v5, 1 }
 0x17c   : > { %1230 = vrot.lane.b32.xlu0 %v1224_v42, %s1601_s7  ;;  %v552_v55 = vadd.f32 %v551_v38, %v550_v14  ;;  %v996_v48 = vsel %vm296_vm12, %v987_v28, 0.0  ;;  %v1117_v56 = vmul.f32 %v2033_v50, %v1928_v9  ;;  %v414_v51 = vrot.slane %v413_v16, 1  ;;  %v567_v9 = vpop.permute.xlu1 %566 }
 0x17d   : > { %v544_v57 = vadd.f32 %v543_v53, %v542_v43  ;;  %v342_v23 = vadd.f32 %v341_v46, %v340_v47  ;;  %v682_v1 = vrot.slane %v681_v62, 2  ;;  %v988_v10 = vmul.f32 %v2021_v29, %v1923_v25 }
 0x17e   : > { %291 = vperm.xlu1 %1486, %v1496_v27   ;;  %v437_v61 = vmul.f32 %v432_v40, %v407_v31  ;;  %v868_v7 = vrot.slane %v2114_v20, 2  ;;  %v436_v60 = vmul.f32 %v428_v49, %v400_v0  ;;  %v861_v14 = vrot.slane %v2065_v45, 2 }
 0x17f   : > { %v689_v12 = vadd.f32 %v688_v41, %v687_v24  ;;  %v990_v15 = vrot.slane %v989_v37, 4  ;;  %v997_v19 = vrot.slane %v996_v48, 4  ;;  %v539_v11 = vadd.f32 %v538_v34, %v537_v5 }
 0x180   : > { %1234 = vrot.lane.b32.xlu0 %v2039_v52, %s1601_s7  ;;  %v553_v29 = vrot.slane %v552_v55, 1  ;;  %v1120_v18 = vsel %vm601_vm14, %v1117_v56, 0.0  ;;  %v415_v3 = vadd.f32 %v414_v51, %v413_v16  ;;  %v545_v35 = vrot.slane %v544_v57, 1  ;;  %v708_v16 = vpop.permute.xlu1 %707 }
 0x181   : > { %v676_v39 = vadd.f32 %v675_v22, %v674_v54  ;;  %v1003_v43 = vsel %vm477_vm15, %v988_v10, 0.0  ;;  %v575_v59 = vmul.f32 %v567_v9, %v539_v11  ;;  %v683_v2 = vadd.f32 %v682_v1, %v681_v62 }
 0x182   : > { %444 = vrot.lane.b32.xlu1 %v437_v61, %s1597_s17  ;;  %v343_v47 = vrot.slane %v342_v23, 1  ;;  %v1118_v52 = vmul.f32 %v2033_v50, %v1941_v17  ;;  %v1119_v58 = vmul.f32 %v2033_v50, %v1923_v25  ;;  %v438_v44 = vmul.f32 %v430_v8, %v415_v3  ;;  %v706_v8 = vpop.permute.xlu0 %705 }
 0x183   : > { %v690_v30 = vrot.slane %v689_v12, 2  ;;  %v1121_v38 = vrot.slane %v1120_v18, 4  ;;  %v571_v54 = vsel %vm570_vm11, %v567_v9, %v569_v36  ;;  %v554_v24 = vadd.f32 %v553_v29, %v552_v55 }
 0x184   : > { %442 = vrot.lane.b32.xlu0 %v436_v60, %s1597_s17  ;;  %v344_v6 = vadd.f32 %v343_v47, %v342_v23  ;;  %v862_v33 = vadd.f32 %v861_v14, %v2065_v45  ;;  %v1004_v5 = vrot.slane %v1003_v43, 4  ;;  %v546_v42 = vadd.f32 %v545_v35, %v544_v57  ;;  %v892_v61 = vpop.permute.xlu1 %891 }
 0x185   : > { %v677_v53 = vrot.slane %v676_v39, 1  ;;  %v998_v28 = vadd.f32 %v997_v19, %v996_v48  ;;  %v684_v17 = vrot.slane %v683_v2, 1  ;;  %v875_v25 = vrot.slane %v2117_v32, 2 }
 0x186   : > { %581 = vrot.lane.b32.xlu1 %v575_v59, %s1598_s24  ;;  %v2148_v50 = vmul.f32 %v2067_v21, %v344_v6  ;;  %v991_v49 = vadd.f32 %v990_v15, %v989_v37  ;;  %v1134_v46 = vsel %vm616_vm0, %v1119_v58, 0.0  ;;  %v576_v45 = vmul.f32 %v571_v54, %v546_v42  ;;  %v890_v60 = vpop.permute.xlu0 %889 }
 0x187   : > { %v691_v62 = vadd.f32 %v690_v30, %v689_v12  ;;  %v1122_v0 = vadd.f32 %v1121_v38, %v1120_v18  ;;  %v1127_v22 = vsel %vm296_vm12, %v1118_v52, 0.0  ;;  %v577_v41 = vmul.f32 %v569_v36, %v554_v24 }
 0x188   : > { %446 = vrot.lane.b32.xlu0 %v438_v44, %s1597_s17  ;;  %v863_v40 = vrot.slane %v862_v33, 1  ;;  %v1005_v31 = vadd.f32 %v1004_v5, %v1003_v43  ;;  %v710_v34 = vsel %vm709_vm7, %v706_v8, %v708_v16  ;;  %v678_v55 = vadd.f32 %v677_v53, %v676_v39  ;;  %v1021_v59 = vpop.permute.xlu1 %1020  ;;  %s170_s17 = scalar_lea.vmem [#allocation6], %s1378_s27 }
 0x189   : > { %v999_v48 = vrot.slane %v998_v28, 2  ;;  %v1135_v21 = vrot.slane %v1134_v46, 4  ;;  %v685_v56 = vadd.f32 %v684_v17, %v683_v2  ;;  %v876_v37 = vadd.f32 %v875_v25, %v2117_v32 }
 0x18a   : > { %585 = vrot.lane.b32.xlu1 %v577_v41, %s1598_s24  ;;  %v1128_v51 = vrot.slane %v1127_v22, 4  ;;  %v692_v57 = vrot.slane %v691_v62, 1  ;;  %v869_v23 = vadd.f32 %v868_v7, %v2114_v20  ;;  %v992_v1 = vrot.slane %v991_v49, 2  ;;  %v1023_v58 = vpop.permute.xlu0 %1022 }
 0x18b   : > { %v1123_v10 = vrot.slane %v1122_v0, 2  ;;  %v715_v27 = vmul.f32 %v710_v34, %v685_v56  ;;  %v1006_v14 = vrot.slane %v1005_v31, 2  ;;  %v714_v12 = vmul.f32 %v706_v8, %v678_v55 }
 0x18c   : > { %583 = vrot.lane.b32.xlu0 %v576_v45, %s1598_s24  ;;  %v864_v9 = vadd.f32 %v863_v40, %v862_v33  ;;  %v1136_v15 = vadd.f32 %v1135_v21, %v1134_v46  ;;  %v877_v19 = vrot.slane %v876_v37, 1  ;;  %v1000_v11 = vadd.f32 %v999_v48, %v998_v28  ;;  %v1154_v45 = vpop.permute.xlu1 %1153  ;;  %s1309_s24 = sshll.u32 %s170_s17, 4  ;;  %s2216_s24 = int_to_ptr.vmem [resolvable:$true] %s1309_s24 }
 0x18d   : > { %v1129_v32 = vadd.f32 %v1128_v51, %v1127_v22  ;;  %v693_v29 = vadd.f32 %v692_v57, %v691_v62  ;;  %v870_v36 = vrot.slane %v869_v23, 1  ;;  %v993_v18 = vadd.f32 %v992_v1, %v991_v49 }
 0x18e   : > { %722 = vrot.lane.b32.xlu1 %v715_v27, %s1602_s10  ;;  %v897_v3 = vmul.f32 %v890_v60, %v864_v9  ;;  %v1124_v20 = vadd.f32 %v1123_v10, %v1122_v0  ;;  %v1007_v7 = vadd.f32 %v1006_v14, %v1005_v31  ;;  %v878_v39 = vadd.f32 %v877_v19, %v876_v37  ;;  %v1152_v8 = vpop.permute.xlu0 %1151 }
 0x18f   : > { %v716_v35 = vmul.f32 %v708_v16, %v693_v29  ;;  %v893_v43 = vsel %vm375_vm5, %v890_v60, %v892_v61  ;;  %v1001_v2 = vrot.slane %v1000_v11, 1  ;;  %v1137_v47 = vrot.slane %v1136_v15, 2 }
 0x190   : > { %720 = vrot.lane.b32.xlu0 %v714_v12, %s1602_s10  ;;  %v1130_v52 = vrot.slane %v1129_v32, 2  ;;  %v871_v44 = vadd.f32 %v870_v36, %v869_v23  ;;  %v994_v30 = vrot.slane %v993_v18, 1  ;;  %v1125_v38 = vrot.slane %v1124_v20, 1 }
 0x191   : > { %v899_v54 = vmul.f32 %v892_v61, %v878_v39  ;;  %v1008_v24 = vrot.slane %v1007_v7, 1  ;;  %v1024_v33 = vsel %vm500_vm1, %v1021_v59, %v1023_v58  ;;  %v1002_v5 = vadd.f32 %v1001_v2, %v1000_v11 }
 0x192   : > { %903 = vrot.lane.b32.xlu1 %v897_v3, %s1599_s19  ;;  %v898_v6 = vmul.f32 %v893_v43, %v871_v44  ;;  %v1138_v42 = vadd.f32 %v1137_v47, %v1136_v15  ;;  %v995_v53 = vadd.f32 %v994_v30, %v993_v18  ;;  %v1131_v28 = vadd.f32 %v1130_v52, %v1129_v32 }
 0x193   : > { %v1126_v16 = vadd.f32 %v1125_v38, %v1124_v20  ;;  %v1029_v17 = vmul.f32 %v1024_v33, %v1002_v5  ;;  %v1009_v25 = vadd.f32 %v1008_v24, %v1007_v7  ;;  %v1155_v40 = vsel %vm639_vm6, %v1152_v8, %v1154_v45 }
 0x194   : > { %724 = vrot.lane.b32.xlu0 %v716_v35, %s1602_s10  ;;  %v1028_v49 = vmul.f32 %v1021_v59, %v995_v53  ;;  %v1139_v46 = vrot.slane %v1138_v42, 1  ;;  %v1132_v62 = vrot.slane %v1131_v28, 1  ;;  %vm448_vm13 = vcmask 1031168  }
 0x195   : > { %v1159_v0 = vmul.f32 %v1152_v8, %v1126_v16  ;;  %v1030_v22 = vmul.f32 %v1023_v58, %v1009_v25  ;;  %vm587_vm14 = vcmask 1014784   ;;  %vm909_vm15 = vcmask 1039360   ;;  %v287_v25 = vld [vmem:[#allocation3 + $0x8] sm:$0x7f] }
 0x196   : > { %907 = vrot.lane.b32.xlu1 %v899_v54, %s1599_s19  ;;  %v1140_v41 = vadd.f32 %v1139_v46, %v1138_v42  ;;  %v1133_v31 = vadd.f32 %v1132_v62, %v1131_v28  ;;  %vm1040_vm0 = vcmask 1022976   ;;  %vm1171_vm1 = vcmask 1006592  }
 0x198   : > { %905 = vrot.lane.b32.xlu0 %v898_v6, %s1599_s19  ;;  %v1161_v34 = vmul.f32 %v1154_v45, %v1140_v41  ;;  %v1160_v55 = vmul.f32 %v1155_v40, %v1133_v31 }
 0x19a   : > { %1036 = vrot.lane.b32.xlu1 %v1029_v17, %s1600_s6  ;;  %v286_v17 = vld [vmem:[#allocation3] sm:$0x7f] }
 0x19c   : > { %1034 = vrot.lane.b32.xlu0 %v1028_v49, %s1600_s6 }
 0x19e   : > { %1165 = vrot.lane.b32.xlu1 %v1159_v0, %s1601_s7 }
 0x1a0   : > { %1038 = vrot.lane.b32.xlu0 %v1030_v22, %s1600_s6  ;;  %s1295_s6 = scalar_lea.sflag [#allocation7], %s168_s26 }
 0x1a2   : > { %1169 = vrot.lane.b32.xlu1 %v1161_v34, %s1601_s7 }
 0x1a4   : > { %1167 = vrot.lane.b32.xlu0 %v1160_v55, %s1601_s7  ;;  %s1509_s7 = scalar_lea.vmem %s2216_s24, 128 }
 0x1a5   : > { %p1510_p2 = scmp.ne.s32.totalorder %s2216_s24, %s1509_s7 }
 0x1a7   : > { %p1511_p3 = pnand %p1510_p2, %p1670_p10 }
 0x1a9   : > { %p1512_p4 = pneg %p1511_p3 }
 0x1bc   : > { %v514_v48 = vpop.permute.xlu1 %513  ;;  %v512_v21 = vpop.permute.xlu0 %511 }
 0x1bd   : > { %v517_v61 = vsel %vm448_vm13, %v512_v21, %v514_v48 }
 0x1be   : > { %v522_v12 = vadd.f32 %v517_v61, %v2148_v50 }
 0x1c0   : > { %v651_v56 = vpop.permute.xlu1 %650  ;;  %v516_v37 = vpop.permute.xlu0 %515 }
 0x1c1   : > { %v518_v15 = vsel %vm448_vm13, %v514_v48, %v516_v37  ;;  %v524_v11 = vadd.f32 %v516_v37, %v2101_v63 }
 0x1c2   : > { %v523_v18 = vadd.f32 %v518_v15, %v2079_v4 }
 0x1c4   : > { %v655_v51 = vpop.permute.xlu1 %654  ;;  %v653_v57 = vpop.permute.xlu0 %652 }
 0x1c5   : > { %v656_v60 = vsel %vm587_vm14, %v651_v56, %v653_v57  ;;  %v657_v32 = vsel %vm587_vm14, %v653_v57, %v655_v51  ;;  %v663_v7 = vadd.f32 %v655_v51, %v524_v11  ;;  %v311_v51 = vld [vmem:[%s2258_s2] ss:$8 sm:$0x3] }
 0x1c6   : > { %v661_v19 = vadd.f32 %v656_v60, %v522_v12  ;;  %v662_v39 = vadd.f32 %v657_v32, %v523_v18 }
 0x1dc   : > { %v840_v23 = vpop.permute.xlu1 %839 }
 0x1dd   : > { %v847_v59 = vadd.f32 %v840_v23, %v663_v7 }
 0x1de   : > { %v838_v1 = vpop.permute.xlu0 %837 }
 0x1df   : > { %v845_v3 = vadd.f32 %v838_v1, %v661_v19  ;;  %v841_v50 = vsel %vm375_vm5, %v838_v1, %v840_v23 }
 0x1e0   : > { %v971_v10 = vpop.permute.xlu1 %970  ;;  %v846_v47 = vadd.f32 %v841_v50, %v662_v39 }
 0x1e2   : > { %v969_v27 = vpop.permute.xlu0 %968 }
 0x1e3   : > { %v974_v29 = vsel %vm909_vm15, %v969_v27, %v971_v10  ;;  %v316_v27 = vrot.slane %v311_v51, %v1702_v13 }
 0x1e4   : > { %v1100_v14 = vpop.permute.xlu1 %1099  ;;  %v979_v43 = vadd.f32 %v974_v29, %v845_v3 }
 0x1e6   : > { %v973_v9 = vpop.permute.xlu0 %972 }
 0x1e7   : > { %v975_v63 = vsel %vm909_vm15, %v971_v10, %v973_v9  ;;  %v981_v44 = vadd.f32 %v973_v9, %v847_v59  ;;  %v320_v9 = vrot.slane %v311_v51, %v1724_v26 }
 0x1e8   : > { %v1104_v36 = vpop.permute.xlu1 %1103  ;;  %v980_v38 = vadd.f32 %v975_v63, %v846_v47 }
 0x1e9   : > { %v1112_v24 = vadd.f32 %v1104_v36, %v981_v44 }
 0x1ea   : > { %v1102_v20 = vpop.permute.xlu0 %1101 }
 0x1eb   : > { %v1105_v35 = vsel %vm1040_vm0, %v1100_v14, %v1102_v20  ;;  %v1106_v4 = vsel %vm1040_vm0, %v1102_v20, %v1104_v36 }
 0x1ec   : > { %v1233_v2 = vpop.permute.xlu1 %1232  ;;  %v1110_v52 = vadd.f32 %v1105_v35, %v979_v43  ;;  %v1111_v6 = vadd.f32 %v1106_v4, %v980_v38 }
 0x1ee   : > { %v1231_v58 = vpop.permute.xlu0 %1230 }
 0x1ef   : > { %v1236_v30 = vsel %vm1171_vm1, %v1231_v58, %v1233_v2 }
 0x1f0   : > { %v1241_v54 = vadd.f32 %v1236_v30, %v1110_v52 }
 0x1f2   : > { %1247 = vrot.lane.b32.xlu0 %v1241_v54, %s1599_s19  ;;  %v1235_v33 = vpop.permute.xlu0 %1234 }
 0x1f3   : > { %v1237_v5 = vsel %vm1171_vm1, %v1233_v2, %v1235_v33  ;;  %v1243_v42 = vadd.f32 %v1235_v33, %v1112_v24 }
 0x1f4   : > { %v1242_v53 = vadd.f32 %v1237_v5, %v1111_v6 }
 0x1f6   : > { %1251 = vrot.lane.b32.xlu0 %v1243_v42, %s1599_s19  ;;  %1249 = vrot.lane.b32.xlu1 %v1242_v53, %s1599_s19  ;;  %v443_v28 = vpop.permute.xlu0 %442  ;;  %s2214_s19 = scalar_lea.hbm %s2260_s4, %s1405_s5 }
 0x1fa   : > { %v447_v16 = vpop.permute.xlu0 %446 }
 0x1fd   : > { %v292_v8 = vpop.permute.xlu1 %291 }
 0x1fe   : > { %v584_v49 = vpop.permute.xlu0 %583  ;;  %v294_v46 = vmul.f32 %v292_v8, %v286_v17  ;;  %v295_v45 = vmul.f32 %v292_v8, %v287_v25 }
 0x200   : > { %v297_v62 = vsel %vm296_vm12, %v294_v46, 0.0  ;;  %v304_v0 = vsel %vm296_vm12, %v295_v45, 0.0  ;;  %vm726_vm12 = vcmask 998400   ;;  %v1260_v46 = vstv %s1259_s15 }
 0x201   : > { %v298_v22 = vrot.slane %v297_v62, 4  ;;  %v305_v41 = vrot.slane %v304_v0, 4  ;;  %v445_v40 = vpop.permute.xlu1 %444 }
 0x202   : > { %v721_v31 = vpop.permute.xlu0 %720  ;;  %v449_v11 = vsel %vm448_vm13, %v443_v28, %v445_v40  ;;  %v450_v7 = vsel %vm448_vm13, %v445_v40, %v447_v16 }
 0x203   : > { %v299_v34 = vadd.f32 %v298_v22, %v297_v62  ;;  %v306_v55 = vadd.f32 %v305_v41, %v304_v0  ;;  %v1264_v41 = vstv %s1396_s16 }
 0x205   : > { %v300_v48 = vrot.slane %v299_v34, 2  ;;  %v307_v21 = vrot.slane %v306_v55, 2  ;;  %v582_v56 = vpop.permute.xlu1 %581 }
 0x206   : > { %v725_v37 = vpop.permute.xlu0 %724  ;;  %v588_v3 = vsel %vm587_vm14, %v582_v56, %v584_v49 }
 0x207   : > { %v301_v57 = vadd.f32 %v300_v48, %v299_v34  ;;  %v308_v23 = vadd.f32 %v307_v21, %v306_v55 }
 0x209   : > { %v302_v1 = vrot.slane %v301_v57, 1  ;;  %v309_v10 = vrot.slane %v308_v23, 1  ;;  %v586_v61 = vpop.permute.xlu1 %585 }
 0x20a   : > { %v906_v14 = vpop.permute.xlu0 %905  ;;  %v589_v26 = vsel %vm587_vm14, %v584_v49, %v586_v61  ;;  %v1279_v61 = vld [vmem:[%s1695_s11] sm:$0xff]  ;;  %s1513_s11 = sshll.u32 %s1603_s23, 4  ;;  %s1514_s11 = int_to_ptr.vmem [resolvable:$false] %s1513_s11 }
 0x20b   : > { %v303_v60 = vadd.f32 %v302_v1, %v301_v57  ;;  %v310_v12 = vadd.f32 %v309_v10, %v308_v23  ;;  %s1515_s8 = scalar_lea.vmem %s1514_s11, 256  ;;  %p1516_p5 = scmp.lt.s32.totalorder %s2216_s24, %s1514_s11 }
 0x20c   : > { %p1517_p6 = scmp.lt.s32.totalorder %s1515_s8, %s1509_s7 }
 0x20d   : > { %v323_v15 = vmul.f32 %v316_v27, %v303_v60  ;;  %v723_v19 = vpop.permute.xlu1 %722  ;;  %v324_v29 = vmul.f32 %v320_v9, %v310_v12 }
 0x20e   : > { %v1035_v36 = vpop.permute.xlu0 %1034  ;;  %v727_v39 = vsel %vm726_vm12, %v721_v31, %v723_v19  ;;  %v728_v44 = vsel %vm726_vm12, %v723_v19, %v725_v37  ;;  %p1518_p7 = por %p1517_p6, %p1516_p5 }
 0x20f   : > { %v453_v32 = vadd.f32 %v449_v11, %v323_v15  ;;  %v454_v50 = vadd.f32 %v450_v7, %v324_v29 }
 0x210   : > { %p1519_p8 = pnand %p1518_p7, %p1512_p4 }
 0x211   : > { %v904_v18 = vpop.permute.xlu1 %903  ;;  %v592_v20 = vadd.f32 %v588_v3, %v453_v32  ;;  %v593_v63 = vadd.f32 %v589_v26, %v454_v50 }
 0x212   : > { %v1039_v59 = vpop.permute.xlu0 %1038  ;;  %v910_v47 = vsel %vm909_vm15, %v904_v18, %v906_v14 }
 0x213   : > { %v731_v43 = vadd.f32 %v727_v39, %v592_v20  ;;  %v732_v30 = vadd.f32 %v728_v44, %v593_v63 }
 0x215   : > { %v908_v35 = vpop.permute.xlu1 %907  ;;  %v914_v58 = vadd.f32 %v910_v47, %v731_v43 }
 0x216   : > { %v911_v4 = vsel %vm909_vm15, %v906_v14, %v908_v35  ;;  %v1168_v38 = vpop.permute.xlu0 %1167 }
 0x217   : > { %v915_v5 = vadd.f32 %v911_v4, %v732_v30 }
 0x219   : > { %v1037_v2 = vpop.permute.xlu1 %1036 }
 0x21a   : > { %v1041_v52 = vsel %vm1040_vm0, %v1035_v36, %v1037_v2  ;;  %v1042_v6 = vsel %vm1040_vm0, %v1037_v2, %v1039_v59 }
 0x21b   : > { %v1045_v54 = vadd.f32 %v1041_v52, %v914_v58  ;;  %v1046_v53 = vadd.f32 %v1042_v6, %v915_v5 }
 0x21d   : > { %v1166_v24 = vpop.permute.xlu1 %1165 }
 0x21e   : > { %v1172_v33 = vsel %vm1171_vm1, %v1166_v24, %v1168_v38 }
 0x21f   : > { %v1176_v42 = vadd.f32 %v1172_v33, %v1045_v54 }
 0x221   : > { %v1170_v28 = vpop.permute.xlu1 %1169 }
 0x222   : > { %v1173_v16 = vsel %vm1171_vm1, %v1168_v38, %v1170_v28 }
 0x223   : > { %v1177_v17 = vadd.f32 %v1173_v16, %v1046_v53 }
 0x264   : > { %v1248_v25 = vpop.permute.xlu0 %1247 }
 0x268   : > { %v1250_v8 = vpop.permute.xlu1 %1249  ;;  %v1252_v49 = vpop.permute.xlu0 %1251 }
 0x269   : > { %v1253_v45 = vsel %vm909_vm15, %v1248_v25, %v1250_v8  ;;  %v1254_v62 = vsel %vm909_vm15, %v1250_v8, %v1252_v49 }
 0x26a   : > { %v1257_v0 = vadd.f32 %v1253_v45, %v1176_v42  ;;  %v1258_v22 = vadd.f32 %v1254_v62, %v1177_v17 }
 0x26c   : > { %v1261_v40 = vmul.f32 %v1260_v46, %v1257_v0  ;;  %v1262_v31 = vmul.f32 %v1260_v46, %v1258_v22 }
 0x26e   : > { %v1265_v34 = vadd.f32 %v1264_v41, %v1261_v40  ;;  %v1266_v55 = vadd.f32 %v1264_v41, %v1262_v31 }
 0x270   : > { %v1397_v48 = vmul.f32 -1.442695, %v1265_v34  ;;  %v1398_v21 = vmul.f32 -1.442695, %v1266_v55 }
 0x272   : > { %1488 = vpow2.f32 %v1397_v48 }
 0x273   : > { %1490 = vpow2.f32 %v1398_v21 }
 0x27c   : > { %v1489_v56 = vpop.eup %1488 }
 0x27d   : > { %v1491_v37 = vpop.eup %1490  ;;  %v1273_v51 = vadd.f32 1.0, %v1489_v56 }
 0x27e   : > { %v1274_v57 = vadd.f32 1.0, %v1491_v37 }
 0x27f   : > { %1492 = vrcp.f32 %v1273_v51 }
 0x280   : > { %1494 = vrcp.f32 %v1274_v57 }
 0x289   : > { %v1493_v23 = vpop.eup %1492 }
 0x28a   : > { %v1495_v1 = vpop.eup %1494  ;;  %v1283_v10 = vrot.slane %v1493_v23, %v1702_v13 }
 0x28b   : > { %v1287_v27 = vrot.slane %v1495_v1, %v1702_v13 }
 0x28d   : > { %v1290_v60 = vcombine.low %v1283_v10, %v1287_v27 }
 0x28f   : > { %v1292_v14 = vmul.f32 %v1290_v60, %v1279_v61 }
 0x291   : > { %1293 = vst [vmem:[%s170_s17] sm:$0xff] %v1292_v14 }
 0x292   : > { %1522 = shalt.err (!%p1519_p8)
}
 0x293   : > { %s1523_s9 = scalar_lea.hbm %s2214_s19, 128  ;;  %s1527_s13 = scalar_lea.hbm %s2260_s4, 256 }
 0x294   : > { %p1524_p9 = scmp.ne.s32.totalorder %s2214_s19, %s1523_s9  ;;  %p1528_p0 = scmp.lt.u32.totalorder %s2214_s19, %s2260_s4 }
 0x295   : > { %p1529_p1 = scmp.lt.u32.totalorder %s1527_s13, %s1523_s9  ;;  %p1531_p3 = scmp.lt.u32.totalorder %s1523_s9, %s2214_s19 }
 0x296   : > { %p1525_p12 = pnand %p1524_p9, %p1670_p10 }
 0x297   : > { %p1530_p2 = por %p1529_p1, %p1528_p0 }
 0x298   : > { %p1526_p13 = pneg %p1525_p12 }
 0x299   : > { %p1532_p4 = por %p1531_p3, %p1530_p2 }
 0x29b   : > { %p1533_p5 = pnand %p1532_p4, %p1526_p13 }
 0x29d   : > { %1536 = shalt.err (!%p1533_p5)
}
 0x29e   : > { %1406 = dma.vmem_to_hbm [thread:$0]  (%p1670_p10), %s2216_s24, 128, %s2214_s19, %s1295_s6  }
 0x29f PF: > { %p1412_p6 = scmp.ge.s32.totalorder %s1573_s22, 2  ;;  %s1321_s26 = sand.u32 1, %s1561_s20  }
 0x2a0   : > { %s1322_s27 = scalar_lea.sflag [#allocation7], %s1321_s26 }
 0x2a1   : > { %p1409_p7 = pnand %p1412_p6, %p1674_p11 }
 0x2a3   : > { %1556 = dma.done.wait (!%p1409_p7), %s1322_s27, 128  }
 0x2a4   : > { %1558 = vsyncadd (!%p1409_p7), %s1322_s27, 4294967168  ;;  %p20_p8 = scmp.ge.s32.totalorder %s1657_s25, 4   ;;  %s2268_s20 = smov %s1565_s21 }
 0x2a5   : > { %s2269_s21 = smov %s1569_s0  ;;  %s2270_s0 = smov %s1668_s28 }
 0x2a6   : > { %s2271_s22 = smov %s1657_s25  ;;  %22 = sbr.rel (!%p20_p8) target bundleno = 18 (0x12), region = 90 }
 0x2ad   :  { %1327 = vsyncpa [#allocation7], 1 }
 0x2ae   :  { %1329 = vsyncpa [#allocation7 + $0x1], 1 }

</bundles_post_ra>
